<compile_context>
chip_gen: v7x
topology: tpu7x:2x2x1
jax: 0.10.0
libtpu: 0.0.40
codegen_flags: <defaults>
</compile_context>

<pallas_src>
import jax
import jax.numpy as jnp
from jax.experimental import pallas as pl
from jax.experimental.pallas import tpu as pltpu

_EPS = 1e-12
_LANE = 128
_SUBLANE = 8
_MAX_BLOCK_COLS = 2048  # lane-dim cap (multiple of 128)


def _vmem_capacity_bytes() -> int:
    try:
        return int(pltpu.get_tpu_info().vmem_capacity_bytes)
    except Exception:
        return 64 << 20  # conservative (v7x per-TC VMEM)


def _pick_blocks(n: int, m: int):
    """Wide, lane-contiguous blocks, sized per TPU generation."""
    vmem = _vmem_capacity_bytes()
    # Budget expressed in f32-equivalent bytes so the in-kernel f32 working set
    # is bounded even for bf16 inputs.
    per_input_budget = (4 << 20) if vmem >= (100 << 20) else (2 << 20)
    # Lane (last) dim first: full contiguous rows when they fit, else 2048 lanes.
    bm = m if m <= _MAX_BLOCK_COLS else _MAX_BLOCK_COLS
    rows = per_input_budget // max(1, bm * 4)
    rows = max(_SUBLANE, (rows // _SUBLANE) * _SUBLANE)
    bn = n if n <= rows else rows
    return bn, bm


def _make_kernel(n, m, bn, bm):
    row_ragged = (n % bn) != 0
    col_ragged = (m % bm) != 0
    strip_acc = (bn % _SUBLANE) == 0  # (8, bm) strip accumulator is legal

    def kernel(p_ref, q_ref, o_ref, acc_ref):
        i = pl.program_id(0)
        j = pl.program_id(1)

        @pl.when(j == 0)
        def _():
            acc_ref[...] = jnp.zeros_like(acc_ref)

        p = jnp.clip(p_ref[...].astype(jnp.float32), _EPS, 1.0)
        q = jnp.clip(q_ref[...].astype(jnp.float32), _EPS, 1.0)
        term = p * jnp.log(p / q)

        # Ragged trailing blocks: cheap broadcasted masks, code only generated
        # when the grid actually overhangs the array. OOB lanes may be NaN
        # after clip/log; jnp.where selects 0.0 so they never propagate.
        if row_ragged:
            rows = i * bn + jax.lax.broadcasted_iota(jnp.int32, (bn, 1), 0)
            term = jnp.where(rows < n, term, 0.0)
        if col_ragged:
            cols = j * bm + jax.lax.broadcasted_iota(jnp.int32, (1, bm), 1)
            term = jnp.where(cols < m, term, 0.0)

        if strip_acc:
            # Fold row groups of 8 into the (8, bm) strip: leading-dim-only
            # reshape (layout-free) + elementwise vreg adds (pure VPU).
            acc_ref[...] += term.reshape(bn // _SUBLANE, _SUBLANE, bm).sum(axis=0)
        else:
            acc_ref[...] += term

        # Emit this row block's partial sum once, at the last column step,
        # as a lane-dense (1, 8, 128) slab (value in [0,0,0], zeros elsewhere).
        @pl.when(j == pl.num_programs(1) - 1)
        def _():
            total = jnp.sum(acc_ref[...])
            sub = jax.lax.broadcasted_iota(jnp.int32, (1, _SUBLANE, _LANE), 1)
            lane = jax.lax.broadcasted_iota(jnp.int32, (1, _SUBLANE, _LANE), 2)
            o_ref[...] = jnp.where((sub == 0) & (lane == 0), total, 0.0)

    return kernel


def kl_loss(P: jax.Array, Q: jax.Array, *, block_rows=None, block_cols=None) -> jax.Array:
    """Pallas TPU implementation of KLLoss.forward (returns scalar float32)."""
    assert P.shape == Q.shape and P.ndim == 2
    n, m = P.shape

    bn, bm = _pick_blocks(n, m)
    if block_rows is not None:  # test / tuning override
        bn = min(block_rows, n)
    if block_cols is not None:
        bm = min(block_cols, m)
    assert bn == n or bn % _SUBLANE == 0, "block rows must be full dim or multiple of 8"
    assert bm == m or bm % _LANE == 0, "block cols must be full dim or multiple of 128"

    grid = (pl.cdiv(n, bn), pl.cdiv(m, bm))
    kernel = _make_kernel(n, m, bn, bm)
    acc_shape = (_SUBLANE, bm) if bn % _SUBLANE == 0 else (bn, bm)

    partials = pl.pallas_call(
        kernel,
        out_shape=jax.ShapeDtypeStruct((grid[0], _SUBLANE, _LANE), jnp.float32),
        grid_spec=pltpu.PrefetchScalarGridSpec(
            num_scalar_prefetch=0,
            grid=grid,
            in_specs=[
                pl.BlockSpec((bn, bm), lambda i, j: (i, j)),
                pl.BlockSpec((bn, bm), lambda i, j: (i, j)),
            ],
            # Per-row-block output block: depends only on i, so the column axis
            # stays a reduction ("arbitrary") while the row axis can be sharded
            # across TensorCores ("parallel") on v7x.
            out_specs=pl.BlockSpec((1, _SUBLANE, _LANE), lambda i, j: (i, 0, 0)),
            scratch_shapes=[pltpu.VMEM(acc_shape, jnp.float32)],
        ),
        compiler_params=pltpu.CompilerParams(
            dimension_semantics=("parallel", "arbitrary"),
            vmem_limit_bytes=32 << 20,
        ),
    )(P, Q)
    # Tiny finishing reduce outside the kernel (grid0 * 1024 f32 values).
    return jnp.sum(partials)


def kl_loss_ref(P, Q):
    P = jnp.clip(P.astype(jnp.float32), _EPS, 1.0)
    Q = jnp.clip(Q.astype(jnp.float32), _EPS, 1.0)
    return jnp.sum(P * jnp.log(P / Q))


def _make_inputs(key, n):
    kp, kq = jax.random.split(key)
    P = jax.nn.softmax(jax.random.normal(kp, (n, n), dtype=jnp.float32), axis=-1)
    Q = jax.nn.softmax(jax.random.normal(kq, (n, n), dtype=jnp.float32), axis=-1)
    return P, Q


if __name__ == "__main__":
    # Small aligned case: single grid step (auto block = full array).
    P, Q = _make_inputs(jax.random.PRNGKey(0), 256)
    out = jax.block_until_ready(kl_loss(P, Q))
    ref = jax.block_until_ready(kl_loss_ref(P, Q))
    assert out.shape == ()
    assert jnp.allclose(out, ref, rtol=1e-5, atol=1e-5), (out, ref)

    # Multi-block ragged case: 600x600 with forced 512x512 blocks -> 2x2 grid
    # with partial trailing blocks. Exercises the in-kernel masks, the
    # per-row-block partial outputs, and the parallel row axis.
    P2, Q2 = _make_inputs(jax.random.PRNGKey(1), 600)
    out2 = jax.block_until_ready(kl_loss(P2, Q2, block_rows=512, block_cols=512))
    ref2 = jax.block_until_ready(kl_loss_ref(P2, Q2))
    assert jnp.allclose(out2, ref2, rtol=1e-4, atol=1e-4), (out2, ref2)

    # bf16 pass-through: inputs stream at 2 B/elem, upcast to f32 in-kernel.
    P3, Q3 = P.astype(jnp.bfloat16), Q.astype(jnp.bfloat16)
    out3 = jax.block_until_ready(kl_loss(P3, Q3))
    ref3 = jax.block_until_ready(kl_loss_ref(P3, Q3))
    assert jnp.allclose(out3, ref3, rtol=1e-3, atol=1e-3), (out3, ref3)

    print("KERNEL_OK")
</pallas_src>

<mosaic_0001>
module attributes {stable_mosaic.version = 11 : i64} {
  func.func @kernel(%arg0: i32, %arg1: i32, %arg2: memref<256x256xf32, #tpu.memory_space<vmem>>, %arg3: memref<256x256xf32, #tpu.memory_space<vmem>>, %arg4: memref<1x8x128xf32, #tpu.memory_space<vmem>>, %arg5: memref<8x256xf32, #tpu.memory_space<vmem>>) attributes {dimension_semantics = [#tpu.dimension_semantics<parallel>, #tpu.dimension_semantics<arbitrary>], iteration_bounds = array<i64: 1, 1>, scalar_prefetch = 0 : i64, scratch_operands = 1 : i64, tpu.core_type = #tpu.core_type<tc>, window_params = [{transform_indices = @transform_0, window_bounds = array<i64: 256, 256>}, {transform_indices = @transform_1, window_bounds = array<i64: 256, 256>}, {transform_indices = @transform_2, window_bounds = array<i64: 1, 8, 128>}]} {
    %c0_i32 = arith.constant 0 : i32
    %0 = arith.cmpi eq, %arg1, %c0_i32 : i32
    %1 = arith.extui %0 : i1 to i32
    %c0_i32_0 = arith.constant 0 : i32
    %2 = arith.cmpi ne, %1, %c0_i32_0 : i32
    scf.if %2 {
      %cst_14 = arith.constant 0.000000e+00 : f32
      %24 = vector.broadcast %cst_14 : f32 to vector<8x256xf32>
      %c0_15 = arith.constant 0 : index
      %c0_16 = arith.constant 0 : index
      %25 = vector.load %arg5[%c0_15, %c0_16] : memref<8x256xf32, #tpu.memory_space<vmem>>, vector<8x256xf32>
      tpu.vector_store %arg5[%c0_15, %c0_16], %24 {strides = array<i32>} : memref<8x256xf32, #tpu.memory_space<vmem>>, vector<8x256xf32>,
    } else {
    }
    %c0 = arith.constant 0 : index
    %c0_1 = arith.constant 0 : index
    %3 = vector.load %arg2[%c0, %c0_1] : memref<256x256xf32, #tpu.memory_space<vmem>>, vector<256x256xf32>
    %cst = arith.constant 9.99999996E-13 : f32
    %cst_2 = arith.constant 1.000000e+00 : f32
    %4 = vector.broadcast %cst : f32 to vector<256x256xf32>
    %5 = arith.maximumf %4, %3 : vector<256x256xf32>
    %6 = vector.broadcast %cst_2 : f32 to vector<256x256xf32>
    %7 = arith.minimumf %6, %5 : vector<256x256xf32>
    %c0_3 = arith.constant 0 : index
    %c0_4 = arith.constant 0 : index
    %8 = vector.load %arg3[%c0_3, %c0_4] : memref<256x256xf32, #tpu.memory_space<vmem>>, vector<256x256xf32>
    %cst_5 = arith.constant 9.99999996E-13 : f32
    %cst_6 = arith.constant 1.000000e+00 : f32
    %9 = vector.broadcast %cst_5 : f32 to vector<256x256xf32>
    %10 = arith.maximumf %9, %8 : vector<256x256xf32>
    %11 = vector.broadcast %cst_6 : f32 to vector<256x256xf32>
    %12 = arith.minimumf %11, %10 : vector<256x256xf32>
    %13 = arith.divf %7, %12 : vector<256x256xf32>
    %14 = math.log %13 : vector<256x256xf32>
    %15 = arith.mulf %7, %14 : vector<256x256xf32>
    %c0_7 = arith.constant 0 : index
    %c0_8 = arith.constant 0 : index
    %16 = vector.load %arg5[%c0_7, %c0_8] : memref<8x256xf32, #tpu.memory_space<vmem>>, vector<8x256xf32>
    %17 = vector.shape_cast %15 : vector<256x256xf32> to vector<32x8x256xf32>
    %cst_9 = arith.constant dense<0.000000e+00> : vector<8x256xf32>
    %18 = vector.multi_reduction <add>, %17, %cst_9 [0] : vector<32x8x256xf32> to vector<8x256xf32>
    %19 = arith.addf %16, %18 : vector<8x256xf32>
    %c0_10 = arith.constant 0 : index
    %c0_11 = arith.constant 0 : index
    %20 = vector.load %arg5[%c0_10, %c0_11] : memref<8x256xf32, #tpu.memory_space<vmem>>, vector<8x256xf32>
    tpu.vector_store %arg5[%c0_10, %c0_11], %19 {strides = array<i32>} : memref<8x256xf32, #tpu.memory_space<vmem>>, vector<8x256xf32>,
    %c0_i32_12 = arith.constant 0 : i32
    %21 = arith.cmpi eq, %arg1, %c0_i32_12 : i32
    %22 = arith.extui %21 : i1 to i32
    %c0_i32_13 = arith.constant 0 : i32
    %23 = arith.cmpi ne, %22, %c0_i32_13 : i32
    scf.if %23 {
      %c0_14 = arith.constant 0 : index
      %c0_15 = arith.constant 0 : index
      %24 = vector.load %arg5[%c0_14, %c0_15] : memref<8x256xf32, #tpu.memory_space<vmem>>, vector<8x256xf32>
      %25 = vector.shape_cast %24 : vector<8x256xf32> to vector<1x8x256xf32>
      %cst_16 = arith.constant dense<0.000000e+00> : vector<1xf32>
      %26 = vector.multi_reduction <add>, %25, %cst_16 [1, 2] : vector<1x8x256xf32> to vector<1xf32>
      %27 = vector.shape_cast %26 : vector<1xf32> to vector<1x1x1xf32>
      %28 = vector.extract %27[0, 0, 0] : f32 from vector<1x1x1xf32>
      %29 = tpu.iota {dimensions = array<i32: 1>} : vector<1x8x128xi32>
      %30 = tpu.iota {dimensions = array<i32: 2>} : vector<1x8x128xi32>
      %c0_i32_17 = arith.constant 0 : i32
      %31 = vector.broadcast %c0_i32_17 : i32 to vector<1x8x128xi32>
      %32 = arith.cmpi eq, %29, %31 : vector<1x8x128xi32>
      %c0_i32_18 = arith.constant 0 : i32
      %33 = vector.broadcast %c0_i32_18 : i32 to vector<1x8x128xi32>
      %34 = arith.cmpi eq, %30, %33 : vector<1x8x128xi32>
      %35 = arith.andi %32, %34 : vector<1x8x128xi1>
      %cst_19 = arith.constant 0.000000e+00 : f32
      %36 = vector.broadcast %28 : f32 to vector<1x8x128xf32>
      %37 = vector.broadcast %cst_19 : f32 to vector<1x8x128xf32>
      %38 = arith.select %35, %36, %37 : vector<1x8x128xi1>, vector<1x8x128xf32>
      %c0_20 = arith.constant 0 : index
      %c0_21 = arith.constant 0 : index
      %c0_22 = arith.constant 0 : index
      %39 = vector.load %arg4[%c0_20, %c0_21, %c0_22] : memref<1x8x128xf32, #tpu.memory_space<vmem>>, vector<1x8x128xf32>
      tpu.vector_store %arg4[%c0_20, %c0_21, %c0_22], %38 {strides = array<i32>} : memref<1x8x128xf32, #tpu.memory_space<vmem>>, vector<1x8x128xf32>,
    } else {
    }
    return
  }
  func.func @transform_0(%arg0: i32, %arg1: i32) -> (i32, i32) {
    %c0_i32 = arith.constant 0 : i32
    return %arg0, %arg1 : i32, i32
  }
  func.func @transform_1(%arg0: i32, %arg1: i32) -> (i32, i32) {
    %c0_i32 = arith.constant 0 : i32
    return %arg0, %arg1 : i32, i32
  }
  func.func @transform_2(%arg0: i32, %arg1: i32) -> (i32, i32, i32) {
    %c0_i32 = arith.constant 0 : i32
    %c0_i32_0 = arith.constant 0 : i32
    %c0_i32_1 = arith.constant 0 : i32
    return %arg0, %c0_i32, %c0_i32_0 : i32, i32, i32
  }
}

</mosaic_0001>

<bundles_post_ra>
// kernel: tpu_custom_call.1
= control target key start
LH: loop header
LB: loop body
LE: loop exit
PB: predicated region body
PF: predicated region fallthrough
CT: control target
= control target key end

     0   :  { %7 = vsyncpa [#allocation4], 0  ;;  %s2099_s0 = inlined_call_operand.hbm [shape: f32[256,256], index: 0, kind: input, shape index: {}]   ;;  %s2100_s1 = inlined_call_operand.hbm [shape: f32[256,256], index: 1, kind: input, shape index: {}]   ;;  %s2101_s2 = inlined_call_operand.hbm [shape: f32[1,8,128], index: 2, kind: output, shape index: {}]  }
   0x1   :  { %8 = vsyncpa [#allocation7], 0 }
   0x2   :  { %9 = vsyncpa [#allocation5], 0  ;;  %s1194_s9 = smov [#allocation3]   ;;  %s1122_s13 = scalar_lea.hbm %s2099_s0, 8192 }
   0x3   :  { %s15_s10 = sshll.u32 %s1194_s9, 4  ;;  %p1123_p0 = scmp.ne.s32.totalorder %s2099_s0, %s1122_s13  ;;  %s16_s10 = int_to_ptr.vmem [resolvable:$true] %s15_s10 }
   0x4   :  { %p1126_p1 = scmp.lt.u32.totalorder %s1122_s13, %s2099_s0 }
   0x6   :  { %p1128_p2 = pnand %p1126_p1, %p1123_p0 }
   0x8   :  { %1131 = shalt.err (!%p1128_p2)
}
   0x9   :  { %s1132_s18 = scalar_lea.vmem %s16_s10, 8192  ;;  %p1137_p4 = scmp.lt.s32.totalorder %s16_s10, %s16_s10 }
   0xa   :  { %p1133_p3 = scmp.ne.s32.totalorder %s16_s10, %s1132_s18  ;;  %p1138_p5 = scmp.lt.s32.totalorder %s1132_s18, %s1132_s18 }
   0xc   :  { %p1139_p6 = por %p1138_p5, %p1137_p4 }
   0xe   :  { %p1140_p7 = pnand %p1139_p6, %p1133_p3 }
  0x10   :  { %1143 = shalt.err (!%p1140_p7)
}
  0x11   :  { %s1195_s19 = smov 256   ;;  %s1196_s20 = smov 16  }
  0x12   :  { %21 = dma.hbm_to_vmem [thread:$0]  %s2099_s0, 8192, %s16_s10, [#allocation4], %s1195_s19, %s1195_s19, %s1196_s20  }
  0x13   :  { %s1197_s23 = smov [#allocation6]   ;;  %s1144_s27 = scalar_lea.hbm %s2100_s1, 8192 }
  0x14   :  { %s27_s24 = sshll.u32 %s1197_s23, 4  ;;  %p1145_p8 = scmp.ne.s32.totalorder %s2100_s1, %s1144_s27  ;;  %s28_s24 = int_to_ptr.vmem [resolvable:$true] %s27_s24 }
  0x15   :  { %p1148_p9 = scmp.lt.u32.totalorder %s1144_s27, %s2100_s1 }
  0x17   :  { %p1150_p10 = pnand %p1148_p9, %p1145_p8 }
  0x19   :  { %1153 = shalt.err (!%p1150_p10)
}
  0x1a   :  { %s1154_s4 = scalar_lea.vmem %s28_s24, 8192  ;;  %p1159_p12 = scmp.lt.s32.totalorder %s28_s24, %s28_s24 }
  0x1b   :  { %p1155_p11 = scmp.ne.s32.totalorder %s28_s24, %s1154_s4  ;;  %p1160_p13 = scmp.lt.s32.totalorder %s1154_s4, %s1154_s4 }
  0x1d   :  { %p1161_p0 = por %p1160_p13, %p1159_p12 }
  0x1f   :  { %p1162_p1 = pnand %p1161_p0, %p1155_p11 }
  0x21   :  { %1165 = shalt.err (!%p1162_p1)
}
  0x22   :  { %33 = dma.hbm_to_vmem [thread:$0]  %s2100_s1, 8192, %s28_s24, [#allocation7], %s1195_s19, %s1195_s19, %s1196_s20  }
  0x23   :  { %1188 = dma.done.wait [#allocation4], 8192  }
  0x24   :  { %1189 = vsyncadd [#allocation4], 4294959104 }
  0x25   :  { %1190 = dma.done.wait [#allocation7], 8192  }
  0x26   :  { %1191 = vsyncadd [#allocation7], 4294959104  ;;  %v46_v0 = vld [vmem:[#allocation3] sm:$0xff]  ;;  %v47_v1 = vld [vmem:[#allocation3 + $0x8] sm:$0xff]  ;;  %s1198_s1 = smov [#allocation8]  }
  0x27   :  { %v48_v2 = vld [vmem:[#allocation3 + $0x10] sm:$0xff]  ;;  %v49_v3 = vld [vmem:[#allocation3 + $0x18] sm:$0xff]  ;;  %v50_v4 = vld [vmem:[#allocation3 + $0x20] sm:$0xff]  ;;  %v110_v9 = vmax.f32 %v46_v0, 1e-12  ;;  %s849_s6 = sshll.u32 %s1198_s1, 4  ;;  %s850_s6 = int_to_ptr.vmem [resolvable:$true] %s849_s6 }
  0x28   :  { %v51_v5 = vld [vmem:[#allocation3 + $0x28] sm:$0xff]  ;;  %v52_v6 = vld [vmem:[#allocation3 + $0x30] sm:$0xff]  ;;  %v53_v7 = vld [vmem:[#allocation3 + $0x38] sm:$0xff]  ;;  %v111_v12 = vmax.f32 %v47_v1, 1e-12  ;;  %s1166_s8 = scalar_lea.vmem %s850_s6, 128  ;;  %p1171_p3 = scmp.lt.s32.totalorder %s850_s6, %s850_s6 }
  0x29   :  { %v54_v8 = vld [vmem:[#allocation3 + $0x40] sm:$0xff]  ;;  %v55_v10 = vld [vmem:[#allocation3 + $0x48] sm:$0xff]  ;;  %v56_v11 = vld [vmem:[#allocation3 + $0x50] sm:$0xff]  ;;  %v112_v13 = vmax.f32 %v48_v2, 1e-12  ;;  %v1254_v30 = vmin.f32 %v110_v9, 1.0  ;;  %p1167_p2 = scmp.ne.s32.totalorder %s850_s6, %s1166_s8  ;;  %p1172_p4 = scmp.lt.s32.totalorder %s1166_s8, %s1166_s8 }
  0x2a   :  { %v113_v14 = vmax.f32 %v49_v3, 1e-12  ;;  %v114_v15 = vmax.f32 %v50_v4, 1e-12  ;;  %v115_v16 = vmax.f32 %v51_v5, 1e-12 }
  0x2b   :  { %v1238_v17 = vld [vmem:[#allocation3 + $0x58] sm:$0xff]  ;;  %v1240_v18 = vld [vmem:[#allocation3 + $0x60] sm:$0xff]  ;;  %v116_v19 = vmax.f32 %v52_v6, 1e-12  ;;  %v117_v20 = vmax.f32 %v53_v7, 1e-12  ;;  %p1173_p5 = por %p1172_p4, %p1171_p3 }
  0x2c   :  { %v118_v21 = vmax.f32 %v54_v8, 1e-12  ;;  %v1242_v22 = vld [vmem:[#allocation3 + $0x68] sm:$0xff]  ;;  %v1244_v23 = vld [vmem:[#allocation3 + $0x70] sm:$0xff]  ;;  %v1246_v24 = vld [vmem:[#allocation3 + $0x78] sm:$0xff]  ;;  %v1256_v31 = vmin.f32 %v111_v12, 1.0 }
  0x2d   :  { %v119_v25 = vmax.f32 %v55_v10, 1e-12  ;;  %v120_v26 = vmax.f32 %v56_v11, 1e-12  ;;  %v1248_v27 = vld [vmem:[#allocation3 + $0x80] sm:$0xff]  ;;  %v1250_v28 = vld [vmem:[#allocation3 + $0x88] sm:$0xff]  ;;  %p1174_p6 = pnand %p1173_p5, %p1167_p2 }
  0x2e   :  { %v1252_v29 = vld [vmem:[#allocation3 + $0x90] sm:$0xff]  ;;  %v1258_v32 = vld [vmem:[#allocation3 + $0x98] sm:$0xff]  ;;  %v1260_v33 = vld [vmem:[#allocation3 + $0xa0] sm:$0xff]  ;;  %v1264_v35 = vmin.f32 %v112_v13, 1.0  ;;  %v1266_v36 = vmin.f32 %v113_v14, 1.0  ;;  %v1268_v37 = vmin.f32 %v114_v15, 1.0 }
  0x2f   :  { %v1262_v34 = vld [vmem:[#allocation3 + $0xa8] sm:$0xff]  ;;  %v1270_v38 = vld [vmem:[#allocation3 + $0xb0] sm:$0xff]  ;;  %v1272_v39 = vld [vmem:[#allocation3 + $0xb8] sm:$0xff]  ;;  %v1276_v41 = vmin.f32 %v115_v16, 1.0  ;;  %v1278_v42 = vmin.f32 %v116_v19, 1.0  ;;  %v1280_v43 = vmin.f32 %v117_v20, 1.0 }
  0x30   :  { %2170 = vst [vmem:[#allocation12_spill] sm:$0xff] %v1266_v36  ;;  %2171 = vst [vmem:[#allocation13_spill] sm:$0xff] %v1268_v37  ;;  %v1274_v40 = vld [vmem:[#allocation3 + $0xc0] sm:$0xff]  ;;  %v1282_v44 = vmin.f32 %v118_v21, 1.0  ;;  %v1284_v45 = vld [vmem:[#allocation3 + $0xc8] sm:$0xff]  ;;  %v1292_v50 = vmin.f32 %v119_v25, 1.0 }
  0x31   :  { %2172 = vst [vmem:[#allocation14_spill] sm:$0xff] %v1276_v41  ;;  %2173 = vst [vmem:[#allocation15_spill] sm:$0xff] %v1278_v42  ;;  %v1286_v46 = vld [vmem:[#allocation3 + $0xd0] sm:$0xff]  ;;  %v1288_v47 = vld [vmem:[#allocation3 + $0xd8] sm:$0xff]  ;;  %v121_v48 = vmax.f32 %v1238_v17, 1e-12 }
  0x32   :  { %2174 = vst [vmem:[#allocation16_spill] sm:$0xff] %v1280_v43  ;;  %2175 = vst [vmem:[#allocation17_spill] sm:$0xff] %v1282_v44  ;;  %v122_v49 = vmax.f32 %v1240_v18, 1e-12  ;;  %v1294_v51 = vmin.f32 %v120_v26, 1.0  ;;  %v1296_v52 = vld [vmem:[#allocation3 + $0xe0] sm:$0xff] }
  0x33   :  { %2176 = vst [vmem:[#allocation18_spill] sm:$0xff] %v1292_v50  ;;  %v1298_v53 = vld [vmem:[#allocation3 + $0xe8] sm:$0xff]  ;;  %v123_v54 = vmax.f32 %v1242_v22, 1e-12  ;;  %v124_v55 = vmax.f32 %v1244_v23, 1e-12 }
  0x34   :  { %2177 = vst [vmem:[#allocation19_spill] sm:$0xff] %v1294_v51  ;;  %v1303_v57 = vld [vmem:[#allocation3 + $0xf0] sm:$0xff]  ;;  %v1305_v58 = vld [vmem:[#allocation3 + $0xf8] sm:$0xff]  ;;  %v1310_v62 = vld [vmem:[#allocation3 + $0x100] sm:$0xff]  ;;  %v1337_v17 = vmin.f32 %v121_v48, 1.0  ;;  %v1347_v25 = vmin.f32 %v122_v49, 1.0 }
  0x35   :  { %v1312_v63 = vld [vmem:[#allocation3 + $0x108] sm:$0xff]  ;;  %v1317_v3 = vld [vmem:[#allocation3 + $0x110] sm:$0xff]  ;;  %v1319_v4 = vld [vmem:[#allocation3 + $0x118] sm:$0xff]  ;;  %v1355_v11 = vmin.f32 %v123_v54, 1.0  ;;  %v2191_v23 = vmax.f32 %v1248_v27, 1e-12 }
  0x36   :  { %v1324_v8 = vld [vmem:[#allocation3 + $0x120] sm:$0xff]  ;;  %v1326_v9 = vld [vmem:[#allocation3 + $0x128] sm:$0xff]  ;;  %v1331_v13 = vld [vmem:[#allocation3 + $0x130] sm:$0xff]  ;;  %2178 = vst [vmem:[#allocation20_spill] sm:$0xff] %v1337_v17  ;;  %v2195_v27 = vmax.f32 %v1252_v29, 1e-12 }
  0x37   :  { %v1333_v14 = vld [vmem:[#allocation3 + $0x138] sm:$0xff]  ;;  %v238_v18 = vld [vmem:[#allocation6] sm:$0xff]  ;;  %v1341_v20 = vld [vmem:[#allocation3 + $0x148] sm:$0xff]  ;;  %2179 = vst [vmem:[#allocation21_spill] sm:$0xff] %v1347_v25  ;;  %v1413_v37 = vmin.f32 %v2191_v23, 1.0 }
  0x38   :  { %v1339_v19 = vld [vmem:[#allocation3 + $0x140] sm:$0xff]  ;;  %v1343_v21 = vld [vmem:[#allocation3 + $0x150] sm:$0xff]  ;;  %v239_v26 = vld [vmem:[#allocation6 + $0x8] sm:$0xff]  ;;  %2180 = vst [vmem:[#allocation22_spill] sm:$0xff] %v1355_v11  ;;  %v302_v22 = vmax.f32 %v238_v18, 1e-12 }
  0x39   :  { %v1349_v12 = vld [vmem:[#allocation3 + $0x158] sm:$0xff]  ;;  %v1351_v15 = vld [vmem:[#allocation3 + $0x160] sm:$0xff]  ;;  %v240_v10 = vld [vmem:[#allocation6 + $0x10] sm:$0xff]  ;;  %v303_v54 = vmax.f32 %v239_v26, 1e-12  ;;  %v1384_v11 = vmin.f32 %v124_v55, 1.0 }
  0x3a   :  { %v1357_v7 = vld [vmem:[#allocation3 + $0x168] sm:$0xff]  ;;  %v1359_v6 = vld [vmem:[#allocation3 + $0x170] sm:$0xff]  ;;  %v1363_v5 = vld [vmem:[#allocation3 + $0x178] sm:$0xff]  ;;  %v304_v60 = vmax.f32 %v240_v10, 1e-12  ;;  %v366_v61 = vmin.f32 %v302_v22, 1.0 }
  0x3b   :  { %v1365_v2 = vld [vmem:[#allocation3 + $0x180] sm:$0xff]  ;;  %v1369_v1 = vld [vmem:[#allocation3 + $0x188] sm:$0xff]  ;;  %v1371_v0 = vld [vmem:[#allocation3 + $0x190] sm:$0xff]  ;;  %2184 = vst [vmem:[#allocation26_spill] sm:$0xff] %v1384_v11  ;;  %v367_v17 = vmin.f32 %v303_v54, 1.0 }
  0x3c   :  { %2181 = vst [vmem:[#allocation23_spill] sm:$0xff] %v1371_v0  ;;  %v1375_v49 = vld [vmem:[#allocation3 + $0x198] sm:$0xff]  ;;  %v1380_v56 = vld [vmem:[#allocation3 + $0x1a0] sm:$0xff]  ;;  %v1386_v25 = vld [vmem:[#allocation3 + $0x1a8] sm:$0xff]  ;;  %v368_v50 = vmin.f32 %v304_v60, 1.0  ;;  %866 = vrcp.f32 %v366_v61 }
  0x3d   :  { %2182 = vst [vmem:[#allocation24_spill] sm:$0xff] %v1375_v49  ;;  %2183 = vst [vmem:[#allocation25_spill] sm:$0xff] %v1380_v56  ;;  %v241_v18 = vld [vmem:[#allocation6 + $0x18] sm:$0xff]  ;;  %v1390_v59 = vld [vmem:[#allocation3 + $0x1b0] sm:$0xff]  ;;  %v2189_v54 = vmax.f32 %v1246_v24, 1e-12  ;;  %868 = vrcp.f32 %v367_v17 }
  0x3e   :  { %2185 = vst [vmem:[#allocation27_spill] sm:$0xff] %v1386_v25  ;;  %2186 = vst [vmem:[#allocation28_spill] sm:$0xff] %v1390_v59  ;;  %v242_v26 = vld [vmem:[#allocation6 + $0x20] sm:$0xff]  ;;  %v1394_v16 = vld [vmem:[#allocation3 + $0x1b8] sm:$0xff]  ;;  %v305_v43 = vmax.f32 %v241_v18, 1e-12  ;;  %870 = vrcp.f32 %v368_v50 }
  0x3f   :  { %2187 = vst [vmem:[#allocation29_spill] sm:$0xff] %v1394_v16  ;;  %v243_v11 = vld [vmem:[#allocation6 + $0x28] sm:$0xff]  ;;  %v1398_v10 = vld [vmem:[#allocation3 + $0x1c0] sm:$0xff]  ;;  %v1403_v44 = vmin.f32 %v2189_v54, 1.0  ;;  %v244_v48 = vld [vmem:[#allocation6 + $0x30] sm:$0xff]  ;;  %v1436_v16 = vmin.f32 %v2195_v27, 1.0 }
  0x40   :  { %2188 = vst [vmem:[#allocation30_spill] sm:$0xff] %v1398_v10  ;;  %v1405_v51 = vld [vmem:[#allocation3 + $0x1c8] sm:$0xff]  ;;  %v245_v42 = vld [vmem:[#allocation6 + $0x38] sm:$0xff]  ;;  %v306_v55 = vmax.f32 %v242_v26, 1e-12  ;;  %v1408_v22 = vld [vmem:[#allocation3 + $0x1d0] sm:$0xff] }
  0x41   :  { %2190 = vst [vmem:[#allocation31_spill] sm:$0xff] %v1403_v44  ;;  %2192 = vst [vmem:[#allocation32_spill] sm:$0xff] %v1413_v37  ;;  %v246_v24 = vld [vmem:[#allocation6 + $0x40] sm:$0xff]  ;;  %v307_v54 = vmax.f32 %v243_v11, 1e-12  ;;  %v1415_v18 = vld [vmem:[#allocation3 + $0x1d8] sm:$0xff] }
  0x42   :  { %v2193_v60 = vmax.f32 %v1250_v28, 1e-12  ;;  %v247_v17 = vld [vmem:[#allocation6 + $0x48] sm:$0xff]  ;;  %v308_v26 = vmax.f32 %v244_v48, 1e-12  ;;  %v1422_v36 = vld [vmem:[#allocation3 + $0x1e0] sm:$0xff] }
  0x43   :  { %v1424_v41 = vld [vmem:[#allocation3 + $0x1e8] sm:$0xff]  ;;  %v248_v23 = vld [vmem:[#allocation6 + $0x50] sm:$0xff]  ;;  %v309_v37 = vmax.f32 %v245_v42, 1e-12  ;;  %v369_v11 = vmin.f32 %v305_v43, 1.0  ;;  %v249_v61 = vld [vmem:[#allocation6 + $0x58] sm:$0xff] }
  0x44   :  { %v1420_v44 = vmin.f32 %v2193_v60, 1.0  ;;  %v1427_v50 = vld [vmem:[#allocation3 + $0x1f0] sm:$0xff]  ;;  %v310_v59 = vmax.f32 %v246_v24, 1e-12  ;;  %v370_v28 = vmin.f32 %v306_v55, 1.0  ;;  %v1430_v60 = vld [vmem:[#allocation3 + $0x1f8] sm:$0xff] }
  0x45   :  { %v371_v56 = vmin.f32 %v307_v54, 1.0  ;;  %2196 = vst [vmem:[#allocation34_spill] sm:$0xff] %v1436_v16  ;;  %v312_v42 = vmax.f32 %v248_v23, 1e-12  ;;  %v372_v43 = vmin.f32 %v308_v26, 1.0  ;;  %v373_v10 = vmin.f32 %v309_v37, 1.0 }
  0x46   :  { %2194 = vst [vmem:[#allocation33_spill] sm:$0xff] %v1420_v44  ;;  %v311_v44 = vmax.f32 %v247_v17, 1e-12  ;;  %v313_v25 = vmax.f32 %v249_v61, 1e-12  ;;  %872 = vrcp.f32 %v369_v11  ;;  %v250_v48 = vld [vmem:[#allocation6 + $0x60] sm:$0xff]  ;;  %v867_v54 = vpop.eup %866 }
  0x47   :  { %v374_v17 = vmin.f32 %v310_v59, 1.0  ;;  %874 = vrcp.f32 %v370_v28  ;;  %v251_v27 = vld [vmem:[#allocation6 + $0x68] sm:$0xff]  ;;  %v869_v26 = vpop.eup %868  ;;  %v2197_v61 = vmax.f32 %v1258_v32, 1e-12  ;;  %v2199_v11 = vmax.f32 %v1260_v33, 1e-12 }
  0x48   :  { %v375_v23 = vmin.f32 %v311_v44, 1.0  ;;  %876 = vrcp.f32 %v371_v56  ;;  %v252_v24 = vld [vmem:[#allocation6 + $0x70] sm:$0xff]  ;;  %v376_v59 = vmin.f32 %v312_v42, 1.0  ;;  %v871_v28 = vpop.eup %870  ;;  %v2201_v49 = vmax.f32 %v1262_v34, 1e-12  ;;  %v253_v29 = vld [vmem:[#allocation6 + $0x78] sm:$0xff] }
  0x49   :  { %v1445_v37 = vmin.f32 %v2197_v61, 1.0  ;;  %v1449_v55 = vmin.f32 %v2199_v11, 1.0  ;;  %878 = vrcp.f32 %v372_v43  ;;  %v314_v44 = vmax.f32 %v250_v48, 1e-12  ;;  %v255_v34 = vld [vmem:[#allocation6 + $0x88] sm:$0xff] }
  0x4a   :  { %v1453_v0 = vmin.f32 %v2201_v49, 1.0  ;;  %v377_v56 = vmin.f32 %v313_v25, 1.0  ;;  %880 = vrcp.f32 %v373_v10  ;;  %v2203_v32 = vmax.f32 %v1270_v38, 1e-12  ;;  %v256_v38 = vld [vmem:[#allocation6 + $0x90] sm:$0xff] }
  0x4b   :  { %2198 = vst [vmem:[#allocation35_spill] sm:$0xff] %v1445_v37  ;;  %2200 = vst [vmem:[#allocation36_spill] sm:$0xff] %v1449_v55  ;;  %v254_v37 = vld [vmem:[#allocation6 + $0x80] sm:$0xff]  ;;  %v315_v33 = vmax.f32 %v251_v27, 1e-12  ;;  %v431_v11 = vmul.f32 %v867_v54, %v1254_v30  ;;  %882 = vrcp.f32 %v374_v17  ;;  %v435_v27 = vmul.f32 %v871_v28, %v1264_v35 }
  0x4c   :  { %2202 = vst [vmem:[#allocation37_spill] sm:$0xff] %v1453_v0  ;;  %v1457_v61 = vmin.f32 %v2203_v32, 1.0  ;;  %v2205_v42 = vmax.f32 %v1272_v39, 1e-12  ;;  %v316_v49 = vmax.f32 %v252_v24, 1e-12  ;;  %v433_v0 = vmul.f32 %v869_v26, %v1256_v31 }
  0x4d   :  { %884 = vrcp.f32 %v375_v23  ;;  %v2207_v25 = vmax.f32 %v1274_v40, 1e-12  ;;  %v317_v48 = vmax.f32 %v253_v29, 1e-12  ;;  %v2209_v17 = vmax.f32 %v1284_v45, 1e-12 }
  0x4e   :  { %2204 = vst [vmem:[#allocation38_spill] sm:$0xff] %v1457_v61  ;;  %v1462_v43 = vmin.f32 %v2205_v42, 1.0  ;;  %886 = vrcp.f32 %v376_v59  ;;  %v257_v39 = vld [vmem:[#allocation6 + $0x98] sm:$0xff]  ;;  %v318_v32 = vmax.f32 %v254_v37, 1e-12  ;;  %v378_v42 = vmin.f32 %v314_v44, 1.0 }
  0x4f   :  { %v1467_v10 = vmin.f32 %v2207_v25, 1.0  ;;  %v1472_v54 = vmin.f32 %v2209_v17, 1.0  ;;  %888 = vrcp.f32 %v377_v56  ;;  %v2211_v24 = vmax.f32 %v1286_v46, 1e-12  ;;  %v258_v40 = vld [vmem:[#allocation6 + $0xa0] sm:$0xff]  ;;  %v259_v45 = vld [vmem:[#allocation6 + $0xa8] sm:$0xff] }
  0x50   :  { %2206 = vst [vmem:[#allocation39_spill] sm:$0xff] %v1462_v43  ;;  %v319_v26 = vmax.f32 %v255_v34, 1e-12  ;;  %v379_v25 = vmin.f32 %v315_v33, 1.0  ;;  %890 = vlog2.f32 %v431_v11  ;;  %v1478_v29 = vpop.eup %872  ;;  %v2213_v59 = vmax.f32 %v1288_v47, 1e-12 }
  0x51   :  { %2208 = vst [vmem:[#allocation40_spill] sm:$0xff] %v1467_v10  ;;  %2210 = vst [vmem:[#allocation41_spill] sm:$0xff] %v1472_v54  ;;  %v1476_v23 = vmin.f32 %v2211_v24, 1.0  ;;  %v320_v17 = vmax.f32 %v256_v38, 1e-12  ;;  %v380_v54 = vmin.f32 %v316_v49, 1.0  ;;  %892 = vlog2.f32 %v433_v0  ;;  %v1484_v37 = vpop.eup %874 }
  0x52   :  { %v1482_v28 = vmin.f32 %v2213_v59, 1.0  ;;  %v2215_v46 = vmax.f32 %v1296_v52, 1e-12  ;;  %v260_v56 = vld [vmem:[#allocation6 + $0xb0] sm:$0xff]  ;;  %v321_v34 = vmax.f32 %v257_v39, 1e-12  ;;  %894 = vlog2.f32 %v435_v27  ;;  %v1490_v11 = vpop.eup %876 }
  0x53   :  { %2212 = vst [vmem:[#allocation42_spill] sm:$0xff] %v1476_v23  ;;  %v381_v33 = vmin.f32 %v317_v48, 1.0  ;;  %v2217_v47 = vmax.f32 %v1298_v53, 1e-12  ;;  %v261_v59 = vld [vmem:[#allocation6 + $0xb8] sm:$0xff]  ;;  %v382_v49 = vmin.f32 %v318_v32, 1.0  ;;  %896 = vrcp.f32 %v378_v42  ;;  %v1496_v0 = vpop.eup %878 }
  0x54   :  { %2214 = vst [vmem:[#allocation43_spill] sm:$0xff] %v1482_v28  ;;  %v1488_v44 = vmin.f32 %v2215_v46, 1.0  ;;  %v322_v38 = vmax.f32 %v258_v40, 1e-12  ;;  %v2219_v52 = vmax.f32 %v1303_v57, 1e-12  ;;  %898 = vrcp.f32 %v379_v25  ;;  %v1502_v27 = vpop.eup %880 }
  0x55   :  { %v1494_v24 = vmin.f32 %v2217_v47, 1.0  ;;  %v323_v39 = vmax.f32 %v259_v45, 1e-12  ;;  %v383_v48 = vmin.f32 %v319_v26, 1.0  ;;  %v2221_v53 = vmax.f32 %v1305_v58, 1e-12  ;;  %v1508_v42 = vpop.eup %882 }
  0x56   :  { %2216 = vst [vmem:[#allocation44_spill] sm:$0xff] %v1488_v44  ;;  %v1500_v46 = vmin.f32 %v2219_v52, 1.0  ;;  %v262_v44 = vld [vmem:[#allocation6 + $0xc0] sm:$0xff]  ;;  %v324_v40 = vmax.f32 %v260_v56, 1e-12  ;;  %v384_v32 = vmin.f32 %v320_v17, 1.0  ;;  %900 = vrcp.f32 %v380_v54 }
  0x57   :  { %2218 = vst [vmem:[#allocation45_spill] sm:$0xff] %v1494_v24  ;;  %v1506_v47 = vmin.f32 %v2221_v53, 1.0  ;;  %v263_v24 = vld [vmem:[#allocation6 + $0xc8] sm:$0xff]  ;;  %v2223_v57 = vmax.f32 %v1310_v62, 1e-12  ;;  %v385_v26 = vmin.f32 %v321_v34, 1.0  ;;  %902 = vrcp.f32 %v381_v33  ;;  %v1514_v25 = vpop.eup %884 }
  0x58   :  { %2220 = vst [vmem:[#allocation46_spill] sm:$0xff] %v1500_v46  ;;  %v264_v46 = vld [vmem:[#allocation6 + $0xd0] sm:$0xff]  ;;  %v325_v45 = vmax.f32 %v261_v59, 1e-12  ;;  %v2225_v58 = vmax.f32 %v1312_v63, 1e-12  ;;  %904 = vrcp.f32 %v382_v49  ;;  %v1520_v54 = vpop.eup %886 }
  0x59   :  { %2222 = vst [vmem:[#allocation47_spill] sm:$0xff] %v1506_v47  ;;  %v1512_v52 = vmin.f32 %v2223_v57, 1.0  ;;  %v265_v47 = vld [vmem:[#allocation6 + $0xd8] sm:$0xff]  ;;  %v326_v56 = vmax.f32 %v262_v44, 1e-12  ;;  %v386_v17 = vmin.f32 %v322_v38, 1.0  ;;  %906 = vrcp.f32 %v383_v48  ;;  %v1526_v33 = vpop.eup %888 }
  0x5a   :  { %v1518_v53 = vmin.f32 %v2225_v58, 1.0  ;;  %v2227_v62 = vmax.f32 %v1317_v3, 1e-12  ;;  %v327_v59 = vmax.f32 %v263_v24, 1e-12  ;;  %v387_v34 = vmin.f32 %v323_v39, 1.0  ;;  %v1532_v49 = vpop.eup %890 }
  0x5b   :  { %2224 = vst [vmem:[#allocation48_spill] sm:$0xff] %v1512_v52  ;;  %v266_v52 = vld [vmem:[#allocation6 + $0xe0] sm:$0xff]  ;;  %v2229_v63 = vmax.f32 %v1319_v4, 1e-12  ;;  %v328_v44 = vmax.f32 %v264_v46, 1e-12  ;;  %908 = vrcp.f32 %v384_v32  ;;  %v1538_v48 = vpop.eup %892 }
  0x5c   :  { %2226 = vst [vmem:[#allocation49_spill] sm:$0xff] %v1518_v53  ;;  %v1524_v57 = vmin.f32 %v2227_v62, 1.0  ;;  %v267_v53 = vld [vmem:[#allocation6 + $0xe8] sm:$0xff]  ;;  %v388_v38 = vmin.f32 %v324_v40, 1.0  ;;  %v2231_v3 = vmax.f32 %v1324_v8, 1e-12  ;;  %910 = vrcp.f32 %v385_v26  ;;  %v1544_v32 = vpop.eup %894 }
  0x5d   :  { %v1530_v58 = vmin.f32 %v2229_v63, 1.0  ;;  %v329_v24 = vmax.f32 %v265_v47, 1e-12  ;;  %v389_v39 = vmin.f32 %v325_v45, 1.0  ;;  %v2233_v4 = vmax.f32 %v1326_v9, 1e-12  ;;  %v1550_v26 = vpop.eup %896 }
  0x5e   :  { %2228 = vst [vmem:[#allocation50_spill] sm:$0xff] %v1524_v57  ;;  %v1536_v62 = vmin.f32 %v2231_v3, 1.0  ;;  %v268_v57 = vld [vmem:[#allocation6 + $0xf0] sm:$0xff]  ;;  %v330_v46 = vmax.f32 %v266_v52, 1e-12  ;;  %v390_v40 = vmin.f32 %v326_v56, 1.0  ;;  %912 = vrcp.f32 %v386_v17  ;;  %v1556_v17 = vpop.eup %898 }
  0x5f   :  { %2230 = vst [vmem:[#allocation51_spill] sm:$0xff] %v1530_v58  ;;  %v1542_v63 = vmin.f32 %v2233_v4, 1.0  ;;  %v269_v58 = vld [vmem:[#allocation6 + $0xf8] sm:$0xff]  ;;  %v2235_v8 = vmax.f32 %v1331_v13, 1e-12  ;;  %v391_v45 = vmin.f32 %v327_v59, 1.0  ;;  %914 = vrcp.f32 %v387_v34 }
  0x60   :  { %2232 = vst [vmem:[#allocation52_spill] sm:$0xff] %v1536_v62  ;;  %v270_v62 = vld [vmem:[#allocation6 + $0x100] sm:$0xff]  ;;  %v331_v47 = vmax.f32 %v267_v53, 1e-12  ;;  %v2237_v9 = vmax.f32 %v1333_v14, 1e-12  ;;  %916 = vrcp.f32 %v388_v38  ;;  %v1562_v34 = vpop.eup %900 }
  0x61   :  { %2234 = vst [vmem:[#allocation53_spill] sm:$0xff] %v1542_v63  ;;  %v1548_v3 = vmin.f32 %v2235_v8, 1.0  ;;  %v271_v63 = vld [vmem:[#allocation6 + $0x108] sm:$0xff]  ;;  %v332_v52 = vmax.f32 %v268_v57, 1e-12  ;;  %v392_v56 = vmin.f32 %v328_v44, 1.0  ;;  %918 = vrcp.f32 %v389_v39  ;;  %v1568_v38 = vpop.eup %902 }
  0x62   :  { %v1554_v4 = vmin.f32 %v2237_v9, 1.0  ;;  %v2239_v13 = vmax.f32 %v1339_v19, 1e-12  ;;  %v333_v53 = vmax.f32 %v269_v58, 1e-12  ;;  %v393_v59 = vmin.f32 %v329_v24, 1.0  ;;  %v1574_v39 = vpop.eup %904 }
  0x63   :  { %2236 = vst [vmem:[#allocation54_spill] sm:$0xff] %v1548_v3  ;;  %v272_v3 = vld [vmem:[#allocation6 + $0x110] sm:$0xff]  ;;  %v2241_v14 = vmax.f32 %v1341_v20, 1e-12  ;;  %v334_v57 = vmax.f32 %v270_v62, 1e-12  ;;  %920 = vrcp.f32 %v390_v40  ;;  %v1580_v40 = vpop.eup %906 }
  0x64   :  { %2238 = vst [vmem:[#allocation55_spill] sm:$0xff] %v1554_v4  ;;  %v1560_v8 = vmin.f32 %v2239_v13, 1.0  ;;  %v273_v4 = vld [vmem:[#allocation6 + $0x118] sm:$0xff]  ;;  %v394_v44 = vmin.f32 %v330_v46, 1.0  ;;  %v2243_v19 = vmax.f32 %v1343_v21, 1e-12  ;;  %922 = vrcp.f32 %v391_v45 }
  0x65   :  { %v1566_v9 = vmin.f32 %v2241_v14, 1.0  ;;  %v335_v58 = vmax.f32 %v271_v63, 1e-12  ;;  %v395_v24 = vmin.f32 %v331_v47, 1.0  ;;  %v2245_v20 = vmax.f32 %v1349_v12, 1e-12  ;;  %v1586_v45 = vpop.eup %908 }
  0x66   :  { %2240 = vst [vmem:[#allocation56_spill] sm:$0xff] %v1560_v8  ;;  %v1572_v13 = vmin.f32 %v2243_v19, 1.0  ;;  %v274_v8 = vld [vmem:[#allocation6 + $0x120] sm:$0xff]  ;;  %v336_v62 = vmax.f32 %v272_v3, 1e-12  ;;  %v396_v46 = vmin.f32 %v332_v52, 1.0  ;;  %924 = vrcp.f32 %v392_v56  ;;  %v1592_v56 = vpop.eup %910 }
  0x67   :  { %2242 = vst [vmem:[#allocation57_spill] sm:$0xff] %v1566_v9  ;;  %v1578_v14 = vmin.f32 %v2245_v20, 1.0  ;;  %v275_v9 = vld [vmem:[#allocation6 + $0x128] sm:$0xff]  ;;  %v2247_v21 = vmax.f32 %v1351_v15, 1e-12  ;;  %v397_v47 = vmin.f32 %v333_v53, 1.0  ;;  %926 = vrcp.f32 %v393_v59 }
  0x68   :  { %2244 = vst [vmem:[#allocation58_spill] sm:$0xff] %v1572_v13  ;;  %v276_v13 = vld [vmem:[#allocation6 + $0x130] sm:$0xff]  ;;  %v337_v63 = vmax.f32 %v273_v4, 1e-12  ;;  %v2249_v12 = vmax.f32 %v1357_v7, 1e-12  ;;  %928 = vrcp.f32 %v394_v44  ;;  %v1598_v59 = vpop.eup %912 }
  0x69   :  { %2246 = vst [vmem:[#allocation59_spill] sm:$0xff] %v1578_v14  ;;  %v1584_v19 = vmin.f32 %v2247_v21, 1.0  ;;  %v277_v14 = vld [vmem:[#allocation6 + $0x138] sm:$0xff]  ;;  %v338_v3 = vmax.f32 %v274_v8, 1e-12  ;;  %v398_v52 = vmin.f32 %v334_v57, 1.0  ;;  %930 = vrcp.f32 %v395_v24  ;;  %v1604_v44 = vpop.eup %914 }
  0x6a   :  { %v1590_v20 = vmin.f32 %v2249_v12, 1.0  ;;  %v2251_v15 = vmax.f32 %v1359_v6, 1e-12  ;;  %v339_v4 = vmax.f32 %v275_v9, 1e-12  ;;  %v399_v53 = vmin.f32 %v335_v58, 1.0  ;;  %v1610_v24 = vpop.eup %916 }
  0x6b   :  { %2248 = vst [vmem:[#allocation60_spill] sm:$0xff] %v1584_v19  ;;  %v278_v19 = vld [vmem:[#allocation6 + $0x140] sm:$0xff]  ;;  %v2253_v7 = vmax.f32 %v1363_v5, 1e-12  ;;  %v340_v8 = vmax.f32 %v276_v13, 1e-12  ;;  %932 = vrcp.f32 %v396_v46  ;;  %v1616_v46 = vpop.eup %918 }
  0x6c   :  { %2250 = vst [vmem:[#allocation61_spill] sm:$0xff] %v1590_v20  ;;  %v1596_v21 = vmin.f32 %v2251_v15, 1.0  ;;  %v279_v20 = vld [vmem:[#allocation6 + $0x148] sm:$0xff]  ;;  %v400_v57 = vmin.f32 %v336_v62, 1.0  ;;  %v2255_v6 = vmax.f32 %v1365_v2, 1e-12  ;;  %934 = vrcp.f32 %v397_v47 }
  0x6d   :  { %v1602_v12 = vmin.f32 %v2253_v7, 1.0  ;;  %v341_v9 = vmax.f32 %v277_v14, 1e-12  ;;  %v401_v58 = vmin.f32 %v337_v63, 1.0  ;;  %v2257_v5 = vmax.f32 %v1369_v1, 1e-12  ;;  %v1622_v47 = vpop.eup %920 }
  0x6e   :  { %2252 = vst [vmem:[#allocation62_spill] sm:$0xff] %v1596_v21  ;;  %v1608_v15 = vmin.f32 %v2255_v6, 1.0  ;;  %v280_v21 = vld [vmem:[#allocation6 + $0x150] sm:$0xff]  ;;  %v342_v13 = vmax.f32 %v278_v19, 1e-12  ;;  %v402_v62 = vmin.f32 %v338_v3, 1.0  ;;  %936 = vrcp.f32 %v398_v52  ;;  %v1628_v52 = vpop.eup %922 }
  0x6f   :  { %2254 = vst [vmem:[#allocation63_spill] sm:$0xff] %v1602_v12  ;;  %v1614_v7 = vmin.f32 %v2257_v5, 1.0  ;;  %v281_v12 = vld [vmem:[#allocation6 + $0x158] sm:$0xff]  ;;  %v2259_v28 = vld [vmem:[#allocation23_spill] sm:$0xff]  ;;  %v343_v14 = vmax.f32 %v279_v20, 1e-12  ;;  %938 = vrcp.f32 %v399_v53 }
  0x70   :  { %2256 = vst [vmem:[#allocation64_spill] sm:$0xff] %v1608_v15  ;;  %v2260_v2 = vmax.f32 %v2259_v28, 1e-12  ;;  %v282_v15 = vld [vmem:[#allocation6 + $0x160] sm:$0xff]  ;;  %v403_v63 = vmin.f32 %v339_v4, 1.0  ;;  %2262 = vst [vmem:[#allocation66_spill] sm:$0xff] %v1622_v47  ;;  %940 = vrcp.f32 %v400_v57  ;;  %v1634_v53 = vpop.eup %924 }
  0x71   :  { %2258 = vst [vmem:[#allocation65_spill] sm:$0xff] %v1614_v7  ;;  %v2263_v23 = vld [vmem:[#allocation24_spill] sm:$0xff]  ;;  %v344_v19 = vmax.f32 %v280_v21, 1e-12  ;;  %v404_v3 = vmin.f32 %v340_v8, 1.0  ;;  %2266 = vst [vmem:[#allocation67_spill] sm:$0xff] %v1628_v52  ;;  %942 = vrcp.f32 %v401_v58  ;;  %v1640_v57 = vpop.eup %926 }
  0x72   :  { %v1620_v6 = vmin.f32 %v2260_v2, 1.0  ;;  %v2264_v1 = vmax.f32 %v2263_v23, 1e-12  ;;  %v283_v7 = vld [vmem:[#allocation6 + $0x168] sm:$0xff]  ;;  %v2267_v10 = vld [vmem:[#allocation25_spill] sm:$0xff]  ;;  %v405_v4 = vmin.f32 %v341_v9, 1.0  ;;  %944 = vrcp.f32 %v402_v62  ;;  %v1646_v58 = vpop.eup %928 }
  0x73   :  { %v2268_v28 = vmax.f32 %v2267_v10, 1e-12  ;;  %v345_v20 = vmax.f32 %v281_v12, 1e-12  ;;  %2270 = vst [vmem:[#allocation68_spill] sm:$0xff] %v1634_v53  ;;  %v2271_v47 = vld [vmem:[#allocation27_spill] sm:$0xff]  ;;  %946 = vrcp.f32 %v403_v63  ;;  %v1652_v62 = vpop.eup %930 }
  0x74   :  { %2261 = vst [vmem:[#allocation23_spill] sm:$0xff] %v1620_v6  ;;  %v1626_v5 = vmin.f32 %v2264_v1, 1.0  ;;  %v284_v6 = vld [vmem:[#allocation6 + $0x170] sm:$0xff]  ;;  %v2272_v23 = vmax.f32 %v2271_v47, 1e-12  ;;  %v406_v8 = vmin.f32 %v342_v13, 1.0  ;;  %948 = vrcp.f32 %v404_v3 }
  0x75   :  { %v1632_v2 = vmin.f32 %v2268_v28, 1.0  ;;  %v346_v21 = vmax.f32 %v282_v15, 1e-12  ;;  %2274 = vst [vmem:[#allocation69_spill] sm:$0xff] %v1640_v57  ;;  %v2275_v52 = vld [vmem:[#allocation28_spill] sm:$0xff]  ;;  %v407_v9 = vmin.f32 %v343_v14, 1.0  ;;  %950 = vrcp.f32 %v405_v4  ;;  %v1658_v63 = vpop.eup %932 }
  0x76   :  { %2265 = vst [vmem:[#allocation24_spill] sm:$0xff] %v1626_v5  ;;  %v1638_v1 = vmin.f32 %v2272_v23, 1.0  ;;  %v285_v5 = vld [vmem:[#allocation6 + $0x178] sm:$0xff]  ;;  %v2276_v10 = vmax.f32 %v2275_v52, 1e-12  ;;  %v2278_v53 = vld [vmem:[#allocation29_spill] sm:$0xff]  ;;  %952 = vrcp.f32 %v406_v8  ;;  %v1664_v3 = vpop.eup %934 }
  0x77   :  { %2269 = vst [vmem:[#allocation25_spill] sm:$0xff] %v1632_v2  ;;  %v286_v2 = vld [vmem:[#allocation6 + $0x180] sm:$0xff]  ;;  %v347_v12 = vmax.f32 %v283_v7, 1e-12  ;;  %v2279_v47 = vmax.f32 %v2278_v53, 1e-12  ;;  %954 = vrcp.f32 %v407_v9 }
  0x78   :  { %2273 = vst [vmem:[#allocation27_spill] sm:$0xff] %v1638_v1  ;;  %v1644_v28 = vmin.f32 %v2276_v10, 1.0  ;;  %v287_v1 = vld [vmem:[#allocation6 + $0x188] sm:$0xff]  ;;  %v348_v15 = vmax.f32 %v284_v6, 1e-12  ;;  %v408_v13 = vmin.f32 %v344_v19, 1.0  ;;  %v1670_v4 = vpop.eup %936 }
  0x79   :  { %v1650_v23 = vmin.f32 %v2279_v47, 1.0  ;;  %v2281_v57 = vld [vmem:[#allocation30_spill] sm:$0xff]  ;;  %v349_v7 = vmax.f32 %v285_v5, 1e-12  ;;  %v409_v14 = vmin.f32 %v345_v20, 1.0  ;;  %v410_v19 = vmin.f32 %v346_v21, 1.0  ;;  %v1676_v8 = vpop.eup %938 }
  0x7a   :  { %2277 = vst [vmem:[#allocation28_spill] sm:$0xff] %v1644_v28  ;;  %v2282_v52 = vmax.f32 %v2281_v57, 1e-12  ;;  %v288_v28 = vld [vmem:[#allocation6 + $0x190] sm:$0xff]  ;;  %v2284_v53 = vmax.f32 %v1405_v51, 1e-12  ;;  %956 = vrcp.f32 %v408_v13  ;;  %v1682_v9 = vpop.eup %940 }
  0x7b   :  { %2280 = vst [vmem:[#allocation29_spill] sm:$0xff] %v1650_v23  ;;  %v289_v23 = vld [vmem:[#allocation6 + $0x198] sm:$0xff]  ;;  %v350_v6 = vmax.f32 %v286_v2, 1e-12  ;;  %v2286_v57 = vmax.f32 %v1408_v22, 1e-12  ;;  %958 = vrcp.f32 %v409_v14  ;;  %v1688_v13 = vpop.eup %942 }
  0x7c   :  { %v1656_v10 = vmin.f32 %v2282_v52, 1.0  ;;  %v1662_v47 = vmin.f32 %v2284_v53, 1.0  ;;  %v351_v5 = vmax.f32 %v287_v1, 1e-12  ;;  %v411_v20 = vmin.f32 %v347_v12, 1.0  ;;  %2292 = vst [vmem:[#allocation74_spill] sm:$0xff] %v1682_v9  ;;  %v1694_v14 = vpop.eup %944 }
  0x7d   :  { %v1668_v52 = vmin.f32 %v2286_v57, 1.0  ;;  %v2288_v51 = vmax.f32 %v1415_v18, 1e-12  ;;  %v352_v2 = vmax.f32 %v288_v28, 1e-12  ;;  %v412_v21 = vmin.f32 %v348_v15, 1.0 }
  0x7e   :  { %2283 = vst [vmem:[#allocation30_spill] sm:$0xff] %v1656_v10  ;;  %2285 = vst [vmem:[#allocation70_spill] sm:$0xff] %v1662_v47  ;;  %v290_v10 = vld [vmem:[#allocation6 + $0x1a0] sm:$0xff]  ;;  %v291_v47 = vld [vmem:[#allocation6 + $0x1a8] sm:$0xff]  ;;  %v2290_v22 = vmax.f32 %v1422_v36, 1e-12  ;;  %960 = vrcp.f32 %v410_v19  ;;  %v1700_v19 = vpop.eup %946 }
  0x7f   :  { %2287 = vst [vmem:[#allocation71_spill] sm:$0xff] %v1668_v52  ;;  %v1674_v53 = vmin.f32 %v2288_v51, 1.0  ;;  %v292_v52 = vld [vmem:[#allocation6 + $0x1b0] sm:$0xff]  ;;  %v353_v1 = vmax.f32 %v289_v23, 1e-12  ;;  %v413_v12 = vmin.f32 %v349_v7, 1.0  ;;  %962 = vrcp.f32 %v411_v20 }
  0x80   :  { %v1680_v57 = vmin.f32 %v2290_v22, 1.0  ;;  %v2293_v18 = vmax.f32 %v1424_v41, 1e-12  ;;  %v354_v28 = vmax.f32 %v290_v10, 1e-12  ;;  %v414_v15 = vmin.f32 %v350_v6, 1.0 }
  0x81   :  { %2289 = vst [vmem:[#allocation72_spill] sm:$0xff] %v1674_v53  ;;  %v293_v53 = vld [vmem:[#allocation6 + $0x1b8] sm:$0xff]  ;;  %2295 = vst [vmem:[#allocation76_spill] sm:$0xff] %v1688_v13  ;;  %v2296_v36 = vmax.f32 %v1427_v50, 1e-12  ;;  %v415_v7 = vmin.f32 %v351_v5, 1.0  ;;  %964 = vrcp.f32 %v412_v21  ;;  %v1706_v5 = vpop.eup %948 }
  0x82   :  { %2291 = vst [vmem:[#allocation73_spill] sm:$0xff] %v1680_v57  ;;  %v1686_v51 = vmin.f32 %v2293_v18, 1.0  ;;  %v294_v57 = vld [vmem:[#allocation6 + $0x1c0] sm:$0xff]  ;;  %v355_v23 = vmax.f32 %v291_v47, 1e-12  ;;  %v416_v6 = vmin.f32 %v352_v2, 1.0  ;;  %966 = vrcp.f32 %v413_v12  ;;  %v1712_v2 = vpop.eup %950 }
  0x83   :  { %v1692_v22 = vmin.f32 %v2296_v36, 1.0  ;;  %v2298_v41 = vmax.f32 %v1430_v60, 1e-12  ;;  %v356_v10 = vmax.f32 %v292_v52, 1e-12  ;;  %2300 = vst [vmem:[#allocation79_spill] sm:$0xff] %v1700_v19  ;;  %968 = vrcp.f32 %v414_v15  ;;  %v1718_v12 = vpop.eup %952 }
  0x84   :  { %2294 = vst [vmem:[#allocation75_spill] sm:$0xff] %v1686_v51  ;;  %v295_v51 = vld [vmem:[#allocation6 + $0x1c8] sm:$0xff]  ;;  %v296_v13 = vld [vmem:[#allocation6 + $0x1d0] sm:$0xff]  ;;  %v297_v50 = vld [vmem:[#allocation6 + $0x1d8] sm:$0xff]  ;;  %v357_v36 = vmax.f32 %v293_v53, 1e-12  ;;  %970 = vrcp.f32 %v415_v7 }
  0x85   :  { %2297 = vst [vmem:[#allocation77_spill] sm:$0xff] %v1692_v22  ;;  %v1698_v18 = vmin.f32 %v2298_v41, 1.0  ;;  %v417_v22 = vmin.f32 %v353_v1, 1.0  ;;  %v2301_v9 = vld [vmem:[#allocation12_spill] sm:$0xff]  ;;  %2302 = vst [vmem:[#allocation80_spill] sm:$0xff] %v1706_v5  ;;  %v418_v20 = vmin.f32 %v354_v28, 1.0  ;;  %972 = vrcp.f32 %v416_v6 }
  0x86   :  { %v1704_v47 = vmul.f32 %v1478_v29, %v2301_v9  ;;  %v358_v60 = vmax.f32 %v294_v57, 1e-12  ;;  %v2303_v41 = vld [vmem:[#allocation13_spill] sm:$0xff]  ;;  %2304 = vst [vmem:[#allocation81_spill] sm:$0xff] %v1712_v2  ;;  %v298_v21 = vld [vmem:[#allocation6 + $0x1e0] sm:$0xff]  ;;  %v419_v1 = vmin.f32 %v355_v23, 1.0 }
  0x87   :  { %2299 = vst [vmem:[#allocation78_spill] sm:$0xff] %v1698_v18  ;;  %v1710_v52 = vmul.f32 %v1484_v37, %v2303_v41  ;;  %v299_v18 = vld [vmem:[#allocation6 + $0x1e8] sm:$0xff]  ;;  %v359_v53 = vmax.f32 %v295_v51, 1e-12  ;;  %v2305_v19 = vld [vmem:[#allocation14_spill] sm:$0xff]  ;;  %2306 = vst [vmem:[#allocation82_spill] sm:$0xff] %v1718_v12  ;;  %v1720_v37 = vpop.eup %954  ;;  %974 = vrcp.f32 %v417_v22 }
  0x88   :  { %v1716_v29 = vmul.f32 %v1490_v11, %v2305_v19  ;;  %v300_v57 = vld [vmem:[#allocation6 + $0x1f0] sm:$0xff]  ;;  %v360_v28 = vmax.f32 %v296_v13, 1e-12  ;;  %v361_v9 = vmax.f32 %v297_v50, 1e-12  ;;  %v420_v5 = vmin.f32 %v356_v10, 1.0  ;;  %v1724_v2 = vpop.eup %956 }
  0x89   :  { %v301_v15 = vld [vmem:[#allocation6 + $0x1f8] sm:$0xff]  ;;  %v421_v41 = vmin.f32 %v357_v36, 1.0  ;;  %v559_v51 = vmul.f32 0.6931472, %v1532_v49  ;;  %v563_v23 = vmul.f32 0.6931472, %v1544_v32  ;;  %976 = vrcp.f32 %v418_v20  ;;  %v1730_v13 = vpop.eup %958 }
  0x8a   :  { %2307 = vst [vmem:[#allocation83_spill] sm:$0xff] %v1724_v2  ;;  %v362_v11 = vmax.f32 %v298_v21, 1e-12  ;;  %v422_v7 = vmin.f32 %v358_v60, 1.0  ;;  %v2308_v19 = vld [vmem:[#allocation15_spill] sm:$0xff]  ;;  %v423_v50 = vmin.f32 %v359_v53, 1.0  ;;  %978 = vrcp.f32 %v419_v1  ;;  %v1732_v22 = vpop.eup %960 }
  0x8b   :  { %v1728_v12 = vmul.f32 %v1496_v0, %v2308_v19  ;;  %v363_v10 = vmax.f32 %v299_v18, 1e-12  ;;  %v364_v6 = vmax.f32 %v300_v57, 1e-12  ;;  %v365_v49 = vmax.f32 %v301_v15, 1e-12  ;;  %v1734_v2 = vpop.eup %962 }
  0x8c   :  { %v424_v36 = vmin.f32 %v360_v28, 1.0  ;;  %v425_v32 = vmin.f32 %v361_v9, 1.0  ;;  %980 = vrcp.f32 %v420_v5  ;;  %v561_v60 = vmul.f32 0.6931472, %v1538_v48  ;;  %v1739_v21 = vpop.eup %964  ;;  %v2309_v53 = vld [vmem:[#allocation16_spill] sm:$0xff]  ;;  %v2310_v57 = vld [vmem:[#allocation17_spill] sm:$0xff] }
  0x8d   :  { %982 = vrcp.f32 %v421_v41  ;;  %v686_v0 = vmul.f32 %v559_v51, %v1254_v30  ;;  %v688_v20 = vmul.f32 %v563_v23, %v1264_v35  ;;  %v426_v18 = vmin.f32 %v362_v11, 1.0  ;;  %v1747_v9 = vpop.eup %966  ;;  %v2311_v41 = vld [vmem:[#allocation18_spill] sm:$0xff]  ;;  %v2312_v30 = vld [vmem:[#allocation19_spill] sm:$0xff]  ;;  %v2313_v23 = vld [vmem:[#allocation20_spill] sm:$0xff] }
  0x8e   :  { %v445_v1 = vmul.f32 %v1502_v27, %v2309_v53  ;;  %v1745_v28 = vmul.f32 %v1508_v42, %v2310_v57  ;;  %984 = vrcp.f32 %v422_v7  ;;  %v427_v5 = vmin.f32 %v363_v10, 1.0  ;;  %v1757_v15 = vpop.eup %968  ;;  %v2314_v7 = vld [vmem:[#allocation21_spill] sm:$0xff] }
  0x8f   :  { %v1751_v48 = vmul.f32 %v1514_v25, %v2311_v41  ;;  %v1755_v35 = vmul.f32 %v1520_v54, %v2312_v30  ;;  %986 = vrcp.f32 %v423_v50  ;;  %v428_v27 = vmin.f32 %v364_v6, 1.0  ;;  %v1763_v11 = vpop.eup %970  ;;  %v2315_v6 = vld [vmem:[#allocation22_spill] sm:$0xff] }
  0x90   :  { %v429_v51 = vmin.f32 %v365_v49, 1.0  ;;  %v1761_v42 = vmul.f32 %v1526_v33, %v2313_v23  ;;  %988 = vrcp.f32 %v424_v36  ;;  %v1767_v25 = vmul.f32 %v1550_v26, %v2314_v7  ;;  %v973_v50 = vpop.eup %972  ;;  %v2316_v33 = vld [vmem:[#allocation26_spill] sm:$0xff]  ;;  %v2317_v23 = vld [vmem:[#allocation31_spill] sm:$0xff] }
  0x91   :  { %990 = vrcp.f32 %v425_v32  ;;  %v1770_v54 = vmul.f32 %v561_v60, %v1256_v31  ;;  %v1772_v10 = vadd.f32 %v688_v20, %v686_v0  ;;  %v1776_v49 = vmul.f32 %v1556_v17, %v2315_v6  ;;  %v975_v26 = vpop.eup %974  ;;  %v2318_v32 = vld [vmem:[#allocation32_spill] sm:$0xff]  ;;  %v2319_v60 = vld [vmem:[#allocation33_spill] sm:$0xff]  ;;  %v2320_v20 = vld [vmem:[#allocation35_spill] sm:$0xff] }
  0x92   :  { %v1780_v36 = vmul.f32 %v1562_v34, %v2316_v33  ;;  %v1784_v30 = vmul.f32 %v1568_v38, %v2317_v23  ;;  %992 = vrcp.f32 %v426_v18  ;;  %v1788_v31 = vmul.f32 %v1574_v39, %v2318_v32  ;;  %v2321_v39 = vld [vmem:[#allocation37_spill] sm:$0xff] }
  0x93   :  { %v1792_v0 = vmul.f32 %v1580_v40, %v2319_v60  ;;  %v1796_v17 = vmul.f32 %v1586_v45, %v1436_v16  ;;  %994 = vrcp.f32 %v427_v5  ;;  %v977_v34 = vpop.eup %976  ;;  %v1800_v38 = vmul.f32 %v1592_v56, %v2320_v20  ;;  %v2322_v56 = vld [vmem:[#allocation40_spill] sm:$0xff]  ;;  %v2323_v20 = vld [vmem:[#allocation66_spill] sm:$0xff]  ;;  %v2325_v60 = vld [vmem:[#allocation67_spill] sm:$0xff] }
  0x94   :  { %v1804_v18 = vmul.f32 %v1598_v59, %v1449_v55  ;;  %v1808_v32 = vmul.f32 %v1604_v44, %v2321_v39  ;;  %996 = vrcp.f32 %v428_v27  ;;  %v979_v40 = vpop.eup %978  ;;  %v1812_v45 = vmul.f32 %v1610_v24, %v1457_v61  ;;  %v2324_v55 = vld [vmem:[#allocation41_spill] sm:$0xff]  ;;  %v2326_v27 = vld [vmem:[#allocation42_spill] sm:$0xff]  ;;  %v2327_v39 = vld [vmem:[#allocation68_spill] sm:$0xff] }
  0x95   :  { %v1816_v5 = vmul.f32 %v1616_v46, %v1462_v43  ;;  %v1820_v16 = vmul.f32 %v2323_v20, %v2322_v56  ;;  %998 = vrcp.f32 %v429_v51  ;;  %v1824_v44 = vmul.f32 %v2325_v60, %v2324_v55  ;;  %v2328_v24 = vld [vmem:[#allocation43_spill] sm:$0xff]  ;;  %v2329_v61 = vld [vmem:[#allocation69_spill] sm:$0xff]  ;;  %v2330_v43 = vld [vmem:[#allocation44_spill] sm:$0xff] }
  0x96   :  { %v981_v59 = vpop.eup %980  ;;  %v1828_v23 = vmul.f32 %v2327_v39, %v2326_v27  ;;  %v1832_v33 = vmul.f32 %v2329_v61, %v2328_v24  ;;  %1000 = vlog2.f32 %v1704_v47  ;;  %v1837_v20 = vmul.f32 %v1646_v58, %v2330_v43  ;;  %v2331_v51 = vld [vmem:[#allocation45_spill] sm:$0xff]  ;;  %v2333_v60 = vld [vmem:[#allocation46_spill] sm:$0xff]  ;;  %v2335_v61 = vld [vmem:[#allocation47_spill] sm:$0xff] }
  0x97   :  { %v983_v46 = vpop.eup %982  ;;  %v1841_v56 = vmul.f32 %v1652_v62, %v2331_v51  ;;  %v1845_v55 = vmul.f32 %v1658_v63, %v2333_v60  ;;  %1002 = vlog2.f32 %v1710_v52  ;;  %v1850_v24 = vmul.f32 %v1664_v3, %v2335_v61  ;;  %v2336_v47 = vld [vmem:[#allocation48_spill] sm:$0xff]  ;;  %v2338_v58 = vld [vmem:[#allocation49_spill] sm:$0xff]  ;;  %v2340_v63 = vld [vmem:[#allocation50_spill] sm:$0xff] }
  0x98   :  { %v985_v39 = vpop.eup %984  ;;  %v1854_v27 = vmul.f32 %v1670_v4, %v2336_v47  ;;  %v1858_v43 = vmul.f32 %v1676_v8, %v2338_v58  ;;  %1004 = vlog2.f32 %v1716_v29  ;;  %v2341_v60 = vld [vmem:[#allocation74_spill] sm:$0xff]  ;;  %v2343_v52 = vld [vmem:[#allocation51_spill] sm:$0xff]  ;;  %v2345_v3 = vld [vmem:[#allocation52_spill] sm:$0xff] }
  0x99   :  { %2332 = vst [vmem:[#allocation15_spill] sm:$0xff] %v1841_v56  ;;  %2334 = vst [vmem:[#allocation16_spill] sm:$0xff] %v1845_v55  ;;  %v987_v62 = vpop.eup %986  ;;  %v1863_v51 = vmul.f32 %v2341_v60, %v2340_v63  ;;  %v2344_v55 = vld [vmem:[#allocation76_spill] sm:$0xff]  ;;  %v1871_v61 = vmul.f32 %v1694_v14, %v2345_v3  ;;  %1006 = vlog2.f32 %v1728_v12  ;;  %v2347_v8 = vld [vmem:[#allocation53_spill] sm:$0xff] }
  0x9a   :  { %2337 = vst [vmem:[#allocation17_spill] sm:$0xff] %v1854_v27  ;;  %2339 = vst [vmem:[#allocation18_spill] sm:$0xff] %v1858_v43  ;;  %v1867_v56 = vmul.f32 %v2344_v55, %v2343_v52  ;;  %v989_v4 = vpop.eup %988  ;;  %v2348_v58 = vld [vmem:[#allocation79_spill] sm:$0xff]  ;;  %v2350_v29 = vld [vmem:[#allocation54_spill] sm:$0xff]  ;;  %1008 = vlog2.f32 %v445_v1 }
  0x9b   :  { %2342 = vst [vmem:[#allocation21_spill] sm:$0xff] %v1863_v51  ;;  %2346 = vst [vmem:[#allocation22_spill] sm:$0xff] %v1871_v61  ;;  %v1876_v47 = vmul.f32 %v2348_v58, %v2347_v8  ;;  %v2351_v43 = vld [vmem:[#allocation80_spill] sm:$0xff]  ;;  %v2352_v60 = vld [vmem:[#allocation55_spill] sm:$0xff]  ;;  %v991_v55 = vpop.eup %990  ;;  %1010 = vlog2.f32 %v1745_v28 }
  0x9c   :  { %v1880_v27 = vmul.f32 %v2351_v43, %v2350_v29  ;;  %v2353_v63 = vld [vmem:[#allocation81_spill] sm:$0xff]  ;;  %v2354_v52 = vld [vmem:[#allocation56_spill] sm:$0xff]  ;;  %v2355_v14 = vld [vmem:[#allocation82_spill] sm:$0xff]  ;;  %v993_v43 = vpop.eup %992  ;;  %1012 = vlog2.f32 %v1751_v48 }
  0x9d   :  { %2349 = vst [vmem:[#allocation66_spill] sm:$0xff] %v1876_v47  ;;  %v1884_v51 = vmul.f32 %v2353_v63, %v2352_v60  ;;  %v1888_v3 = vmul.f32 %v2355_v14, %v2354_v52  ;;  %v2356_v12 = vld [vmem:[#allocation57_spill] sm:$0xff]  ;;  %v2357_v58 = vld [vmem:[#allocation58_spill] sm:$0xff]  ;;  %v2358_v8 = vld [vmem:[#allocation83_spill] sm:$0xff]  ;;  %1014 = vlog2.f32 %v1755_v35 }
  0x9e   :  { %v1892_v61 = vmul.f32 %v1720_v37, %v2356_v12  ;;  %v1896_v47 = vmul.f32 %v2358_v8, %v2357_v58  ;;  %v2359_v29 = vld [vmem:[#allocation59_spill] sm:$0xff]  ;;  %v2360_v1 = vld [vmem:[#allocation60_spill] sm:$0xff]  ;;  %v2361_v14 = vld [vmem:[#allocation61_spill] sm:$0xff]  ;;  %v995_v37 = vpop.eup %994  ;;  %1016 = vlog2.f32 %v1761_v42 }
  0x9f   :  { %v1901_v63 = vmul.f32 %v1730_v13, %v2359_v29  ;;  %v1905_v60 = vmul.f32 %v1732_v22, %v2360_v1  ;;  %v1909_v52 = vmul.f32 %v1734_v2, %v2361_v14  ;;  %v2362_v8 = vld [vmem:[#allocation62_spill] sm:$0xff]  ;;  %v2363_v28 = vld [vmem:[#allocation63_spill] sm:$0xff]  ;;  %v2365_v13 = vld [vmem:[#allocation64_spill] sm:$0xff]  ;;  %v997_v22 = vpop.eup %996  ;;  %1018 = vlog2.f32 %v1767_v25 }
  0xa0   :  { %v1914_v58 = vmul.f32 %v1739_v21, %v2362_v8  ;;  %v1918_v12 = vmul.f32 %v1747_v9, %v2363_v28  ;;  %v1922_v29 = vmul.f32 %v1757_v15, %v2365_v13  ;;  %v2367_v2 = vld [vmem:[#allocation65_spill] sm:$0xff]  ;;  %v2368_v48 = vld [vmem:[#allocation23_spill] sm:$0xff]  ;;  %v2369_v21 = vld [vmem:[#allocation24_spill] sm:$0xff]  ;;  %v999_v9 = vpop.eup %998  ;;  %1020 = vlog2.f32 %v1776_v49 }
  0xa1   :  { %v1927_v14 = vmul.f32 %v1763_v11, %v2367_v2  ;;  %v1930_v1 = vmul.f32 %v973_v50, %v2368_v48  ;;  %v1933_v8 = vmul.f32 %v975_v26, %v2369_v21  ;;  %v2370_v28 = vld [vmem:[#allocation25_spill] sm:$0xff]  ;;  %v2371_v15 = vld [vmem:[#allocation27_spill] sm:$0xff]  ;;  %v2372_v35 = vld [vmem:[#allocation28_spill] sm:$0xff]  ;;  %v1001_v11 = vpop.eup %1000  ;;  %1022 = vlog2.f32 %v1780_v36 }
  0xa2   :  { %2364 = vst [vmem:[#allocation67_spill] sm:$0xff] %v1918_v12  ;;  %2366 = vst [vmem:[#allocation68_spill] sm:$0xff] %v1922_v29  ;;  %v1937_v12 = vmul.f32 %v977_v34, %v2370_v28  ;;  %v1940_v13 = vmul.f32 %v979_v40, %v2371_v15  ;;  %v1943_v29 = vmul.f32 %v981_v59, %v2372_v35  ;;  %v2373_v50 = vld [vmem:[#allocation29_spill] sm:$0xff]  ;;  %v2374_v26 = vld [vmem:[#allocation30_spill] sm:$0xff]  ;;  %v1003_v34 = vpop.eup %1002  ;;  %v565_v25 = vmul.f32 0.6931472, %v1001_v11 }
  0xa3   :  { %v1947_v48 = vmul.f32 %v983_v46, %v2373_v50  ;;  %v1950_v21 = vmul.f32 %v985_v39, %v2374_v26  ;;  %v2375_v42 = vld [vmem:[#allocation70_spill] sm:$0xff]  ;;  %v2376_v40 = vld [vmem:[#allocation71_spill] sm:$0xff]  ;;  %v2377_v59 = vld [vmem:[#allocation72_spill] sm:$0xff]  ;;  %v1005_v46 = vpop.eup %1004  ;;  %1024 = vlog2.f32 %v1784_v30 }
  0xa4   :  { %v1953_v2 = vmul.f32 %v987_v62, %v2375_v42  ;;  %v1957_v15 = vmul.f32 %v989_v4, %v2376_v40  ;;  %v1960_v35 = vmul.f32 %v991_v55, %v2377_v59  ;;  %v2379_v50 = vld [vmem:[#allocation73_spill] sm:$0xff]  ;;  %v2380_v39 = vld [vmem:[#allocation75_spill] sm:$0xff]  ;;  %v567_v62 = vmul.f32 0.6931472, %v1003_v34  ;;  %v1007_v49 = vpop.eup %1006  ;;  %v2382_v55 = vld [vmem:[#allocation12_spill] sm:$0xff] }
  0xa5   :  { %v1964_v28 = vmul.f32 %v993_v43, %v2379_v50  ;;  %v1967_v26 = vmul.f32 %v995_v37, %v2380_v39  ;;  %v2381_v42 = vld [vmem:[#allocation77_spill] sm:$0xff]  ;;  %v569_v40 = vmul.f32 0.6931472, %v1005_v46  ;;  %1026 = vlog2.f32 %v1788_v31  ;;  %v1009_v36 = vpop.eup %1008  ;;  %v2383_v59 = vld [vmem:[#allocation78_spill] sm:$0xff] }
  0xa6   :  { %2378 = vst [vmem:[#allocation69_spill] sm:$0xff] %v1960_v35  ;;  %v1971_v4 = vmul.f32 %v997_v22, %v2381_v42  ;;  %v689_v11 = vmul.f32 %v565_v25, %v2382_v55  ;;  %v1976_v35 = vmul.f32 %v999_v9, %v2383_v59  ;;  %v571_v43 = vmul.f32 0.6931472, %v1007_v49  ;;  %v2384_v37 = vld [vmem:[#allocation13_spill] sm:$0xff]  ;;  %v1011_v39 = vpop.eup %1010  ;;  %v2385_v22 = vld [vmem:[#allocation14_spill] sm:$0xff] }
  0xa7   :  { %1028 = vlog2.f32 %v1792_v0  ;;  %v690_v34 = vmul.f32 %v567_v62, %v2384_v37  ;;  %v573_v30 = vmul.f32 0.6931472, %v1009_v36  ;;  %v691_v42 = vmul.f32 %v569_v40, %v2385_v22  ;;  %v1013_v31 = vpop.eup %1012 }
  0xa8   :  { %1030 = vlog2.f32 %v1796_v17  ;;  %v783_v46 = vadd.f32 %v689_v11, %v1770_v54  ;;  %v575_v50 = vmul.f32 0.6931472, %v1011_v39  ;;  %v692_v9 = vmul.f32 %v571_v43, %v2308_v19  ;;  %v1015_v49 = vpop.eup %1014 }
  0xa9   :  { %1032 = vlog2.f32 %v1800_v38  ;;  %v753_v25 = vadd.f32 %v1772_v10, %v690_v34  ;;  %v577_v0 = vmul.f32 0.6931472, %v1013_v31  ;;  %v693_v62 = vmul.f32 %v573_v30, %v2309_v53  ;;  %v1017_v17 = vpop.eup %1016  ;;  %v2386_v53 = vld [vmem:[#allocation19_spill] sm:$0xff] }
  0xaa   :  { %1034 = vlog2.f32 %v1804_v18  ;;  %v784_v55 = vadd.f32 %v783_v46, %v691_v42  ;;  %v579_v36 = vmul.f32 0.6931472, %v1015_v49  ;;  %v694_v54 = vmul.f32 %v575_v50, %v2310_v57  ;;  %v1019_v39 = vpop.eup %1018  ;;  %v2387_v57 = vld [vmem:[#allocation20_spill] sm:$0xff] }
  0xab   :  { %1036 = vlog2.f32 %v1808_v32  ;;  %v754_v40 = vadd.f32 %v753_v25, %v692_v9  ;;  %v581_v38 = vmul.f32 0.6931472, %v1017_v17  ;;  %v695_v19 = vmul.f32 %v577_v0, %v2311_v41  ;;  %v1021_v11 = vpop.eup %1020 }
  0xac   :  { %1038 = vlog2.f32 %v1812_v45  ;;  %v785_v10 = vadd.f32 %v784_v55, %v693_v62  ;;  %v583_v43 = vmul.f32 0.6931472, %v1019_v39  ;;  %v696_v18 = vmul.f32 %v579_v36, %v2386_v53  ;;  %v1023_v37 = vpop.eup %1022 }
  0xad   :  { %1040 = vlog2.f32 %v1816_v5  ;;  %v755_v42 = vadd.f32 %v754_v40, %v694_v54  ;;  %v585_v34 = vmul.f32 0.6931472, %v1021_v11  ;;  %v697_v32 = vmul.f32 %v581_v38, %v2387_v57  ;;  %v1025_v30 = vpop.eup %1024  ;;  %v2393_v11 = vld [vmem:[#allocation33_spill] sm:$0xff] }
  0xae   :  { %1042 = vlog2.f32 %v1820_v16  ;;  %v786_v50 = vadd.f32 %v785_v10, %v695_v19  ;;  %v587_v22 = vmul.f32 0.6931472, %v1023_v37  ;;  %v698_v41 = vmul.f32 %v583_v43, %v2314_v7  ;;  %v2388_v16 = vld [vmem:[#allocation26_spill] sm:$0xff]  ;;  %v2389_v7 = vld [vmem:[#allocation31_spill] sm:$0xff] }
  0xaf   :  { %1044 = vlog2.f32 %v1824_v44  ;;  %v756_v45 = vadd.f32 %v755_v42, %v696_v18  ;;  %v1027_v46 = vpop.eup %1026  ;;  %v589_v31 = vmul.f32 0.6931472, %v1025_v30  ;;  %v699_v5 = vmul.f32 %v585_v34, %v2315_v6  ;;  %v2391_v6 = vld [vmem:[#allocation32_spill] sm:$0xff]  ;;  %v2396_v30 = vld [vmem:[#allocation35_spill] sm:$0xff] }
  0xb0   :  { %1046 = vlog2.f32 %v1828_v23  ;;  %v787_v9 = vadd.f32 %v786_v50, %v697_v32  ;;  %v591_v49 = vmul.f32 0.6931472, %v1027_v46  ;;  %v700_v0 = vmul.f32 %v587_v22, %v2388_v16  ;;  %v2390_v23 = vld [vmem:[#allocation15_spill] sm:$0xff]  ;;  %v2395_v50 = vld [vmem:[#allocation17_spill] sm:$0xff] }
  0xb1   :  { %v1029_v25 = vpop.eup %1028  ;;  %1048 = vlog2.f32 %v1832_v33  ;;  %v757_v62 = vadd.f32 %v756_v45, %v698_v41  ;;  %v701_v44 = vmul.f32 %v589_v31, %v2389_v7  ;;  %v2392_v33 = vld [vmem:[#allocation16_spill] sm:$0xff]  ;;  %v2397_v31 = vld [vmem:[#allocation18_spill] sm:$0xff] }
  0xb2   :  { %v1031_v55 = vpop.eup %1030  ;;  %v593_v17 = vmul.f32 0.6931472, %v1029_v25  ;;  %1050 = vlog2.f32 %v1837_v20  ;;  %v788_v36 = vadd.f32 %v787_v9, %v699_v5  ;;  %v702_v39 = vmul.f32 %v591_v49, %v2391_v6  ;;  %v2394_v20 = vld [vmem:[#allocation34_spill] sm:$0xff]  ;;  %v2398_v5 = vld [vmem:[#allocation36_spill] sm:$0xff] }
  0xb3   :  { %v1033_v54 = vpop.eup %1032  ;;  %v595_v40 = vmul.f32 0.6931472, %v1031_v55  ;;  %1052 = vlog2.f32 %v2390_v23  ;;  %v758_v38 = vadd.f32 %v757_v62, %v700_v0  ;;  %v2400_v0 = vld [vmem:[#allocation37_spill] sm:$0xff]  ;;  %v2402_v6 = vld [vmem:[#allocation22_spill] sm:$0xff] }
  0xb4   :  { %v1035_v19 = vpop.eup %1034  ;;  %v597_v10 = vmul.f32 0.6931472, %v1033_v54  ;;  %1054 = vlog2.f32 %v2392_v33  ;;  %v703_v43 = vmul.f32 %v593_v17, %v2393_v11  ;;  %v789_v53 = vadd.f32 %v788_v36, %v701_v44  ;;  %v2401_v44 = vld [vmem:[#allocation38_spill] sm:$0xff] }
  0xb5   :  { %v1037_v18 = vpop.eup %1036  ;;  %v599_v42 = vmul.f32 0.6931472, %v1035_v19  ;;  %1056 = vlog2.f32 %v1850_v24  ;;  %v704_v37 = vmul.f32 %v595_v40, %v2394_v20  ;;  %v759_v34 = vadd.f32 %v758_v38, %v702_v39  ;;  %v2399_v24 = vld [vmem:[#allocation21_spill] sm:$0xff]  ;;  %v2403_v39 = vld [vmem:[#allocation39_spill] sm:$0xff]  ;;  %v2404_v11 = vld [vmem:[#allocation66_spill] sm:$0xff] }
  0xb6   :  { %v1039_v57 = vpop.eup %1038  ;;  %v601_v32 = vmul.f32 0.6931472, %v1037_v18  ;;  %1058 = vlog2.f32 %v2395_v50  ;;  %v705_v22 = vmul.f32 %v597_v10, %v2396_v30  ;;  %v790_v41 = vadd.f32 %v789_v53, %v703_v43  ;;  %v2405_v43 = vld [vmem:[#allocation40_spill] sm:$0xff]  ;;  %v2407_v50 = vld [vmem:[#allocation42_spill] sm:$0xff] }
  0xb7   :  { %v1041_v45 = vpop.eup %1040  ;;  %v603_v46 = vmul.f32 0.6931472, %v1039_v57  ;;  %1060 = vlog2.f32 %v2397_v31  ;;  %v706_v9 = vmul.f32 %v599_v42, %v2398_v5  ;;  %v760_v25 = vadd.f32 %v759_v34, %v704_v37 }
  0xb8   :  { %v1043_v49 = vpop.eup %1042  ;;  %v605_v16 = vmul.f32 0.6931472, %v1041_v45  ;;  %1062 = vlog2.f32 %v2399_v24  ;;  %v707_v62 = vmul.f32 %v601_v32, %v2400_v0  ;;  %v791_v55 = vadd.f32 %v790_v41, %v705_v22 }
  0xb9   :  { %v1045_v17 = vpop.eup %1044  ;;  %v607_v7 = vmul.f32 0.6931472, %v1043_v49  ;;  %1064 = vlog2.f32 %v1867_v56  ;;  %v708_v36 = vmul.f32 %v603_v46, %v2401_v44  ;;  %v761_v54 = vadd.f32 %v760_v25, %v706_v9  ;;  %v2406_v56 = vld [vmem:[#allocation41_spill] sm:$0xff]  ;;  %v2408_v46 = vld [vmem:[#allocation43_spill] sm:$0xff] }
  0xba   :  { %v1047_v40 = vpop.eup %1046  ;;  %v609_v23 = vmul.f32 0.6931472, %v1045_v17  ;;  %1066 = vlog2.f32 %v2402_v6  ;;  %v709_v38 = vmul.f32 %v605_v16, %v2403_v39  ;;  %v792_v19 = vadd.f32 %v791_v55, %v707_v62 }
  0xbb   :  { %v1049_v10 = vpop.eup %1048  ;;  %v611_v33 = vmul.f32 0.6931472, %v1047_v40  ;;  %1068 = vlog2.f32 %v2404_v11  ;;  %v710_v53 = vmul.f32 %v607_v7, %v2405_v43  ;;  %v762_v18 = vadd.f32 %v761_v54, %v708_v36 }
  0xbc   :  { %v1051_v42 = vpop.eup %1050  ;;  %v613_v20 = vmul.f32 0.6931472, %v1049_v10  ;;  %1070 = vlog2.f32 %v1880_v27  ;;  %v711_v37 = vmul.f32 %v609_v23, %v2406_v56  ;;  %v793_v34 = vadd.f32 %v792_v19, %v709_v38  ;;  %v2409_v27 = vld [vmem:[#allocation44_spill] sm:$0xff] }
  0xbd   :  { %v1053_v57 = vpop.eup %1052  ;;  %v615_v32 = vmul.f32 0.6931472, %v1051_v42  ;;  %1072 = vlog2.f32 %v1884_v51  ;;  %v712_v30 = vmul.f32 %v611_v33, %v2407_v50  ;;  %v763_v22 = vadd.f32 %v762_v18, %v710_v53  ;;  %v2410_v51 = vld [vmem:[#allocation45_spill] sm:$0xff] }
  0xbe   :  { %v1055_v41 = vpop.eup %1054  ;;  %v617_v45 = vmul.f32 0.6931472, %v1053_v57  ;;  %1074 = vlog2.f32 %v1888_v3  ;;  %v713_v31 = vmul.f32 %v613_v20, %v2408_v46  ;;  %v794_v5 = vadd.f32 %v793_v34, %v711_v37  ;;  %v2411_v3 = vld [vmem:[#allocation46_spill] sm:$0xff] }
  0xbf   :  { %v1057_v9 = vpop.eup %1056  ;;  %v619_v25 = vmul.f32 0.6931472, %v1055_v41  ;;  %1076 = vlog2.f32 %v1892_v61  ;;  %v714_v49 = vmul.f32 %v615_v32, %v2409_v27  ;;  %v764_v16 = vadd.f32 %v763_v22, %v712_v30  ;;  %v2412_v61 = vld [vmem:[#allocation47_spill] sm:$0xff]  ;;  %v2416_v20 = vld [vmem:[#allocation50_spill] sm:$0xff] }
  0xc0   :  { %v1059_v24 = vpop.eup %1058  ;;  %v621_v0 = vmul.f32 0.6931472, %v1057_v9  ;;  %1078 = vlog2.f32 %v1896_v47  ;;  %v715_v62 = vmul.f32 %v617_v45, %v2410_v51  ;;  %v795_v55 = vadd.f32 %v794_v5, %v713_v31  ;;  %v2413_v47 = vld [vmem:[#allocation48_spill] sm:$0xff]  ;;  %v2418_v32 = vld [vmem:[#allocation51_spill] sm:$0xff]  ;;  %v2420_v9 = vld [vmem:[#allocation53_spill] sm:$0xff] }
  0xc1   :  { %v1061_v17 = vpop.eup %1060  ;;  %v623_v7 = vmul.f32 0.6931472, %v1059_v24  ;;  %1080 = vlog2.f32 %v1901_v63  ;;  %v716_v44 = vmul.f32 %v619_v25, %v2411_v3  ;;  %v765_v36 = vadd.f32 %v764_v16, %v714_v49  ;;  %v2414_v63 = vld [vmem:[#allocation49_spill] sm:$0xff]  ;;  %v2421_v24 = vld [vmem:[#allocation54_spill] sm:$0xff] }
  0xc2   :  { %v1063_v54 = vpop.eup %1062  ;;  %v625_v40 = vmul.f32 0.6931472, %v1061_v17  ;;  %1082 = vlog2.f32 %v1905_v60  ;;  %v717_v23 = vmul.f32 %v621_v0, %v2412_v61  ;;  %v796_v6 = vadd.f32 %v795_v55, %v715_v62  ;;  %v2415_v60 = vld [vmem:[#allocation67_spill] sm:$0xff] }
  0xc3   :  { %v1065_v39 = vpop.eup %1064  ;;  %v627_v38 = vmul.f32 0.6931472, %v1063_v54  ;;  %1084 = vlog2.f32 %v1909_v52  ;;  %v718_v19 = vmul.f32 %v623_v7, %v2413_v47  ;;  %v766_v10 = vadd.f32 %v765_v36, %v716_v44  ;;  %v2417_v52 = vld [vmem:[#allocation68_spill] sm:$0xff] }
  0xc4   :  { %v1067_v33 = vpop.eup %1066  ;;  %v629_v11 = vmul.f32 0.6931472, %v1065_v39  ;;  %1086 = vlog2.f32 %v1914_v58  ;;  %v719_v43 = vmul.f32 %v625_v40, %v2414_v63  ;;  %v797_v53 = vadd.f32 %v796_v6, %v717_v23  ;;  %v2419_v58 = vld [vmem:[#allocation52_spill] sm:$0xff] }
  0xc5   :  { %v1069_v18 = vpop.eup %1068  ;;  %v631_v42 = vmul.f32 0.6931472, %v1067_v33  ;;  %1088 = vlog2.f32 %v2415_v60  ;;  %v720_v56 = vmul.f32 %v627_v38, %v2416_v20  ;;  %v767_v37 = vadd.f32 %v766_v10, %v718_v19 }
  0xc6   :  { %v1071_v34 = vpop.eup %1070  ;;  %v633_v57 = vmul.f32 0.6931472, %v1069_v18  ;;  %1090 = vlog2.f32 %v2417_v52  ;;  %v721_v50 = vmul.f32 %v629_v11, %v2418_v32  ;;  %v798_v30 = vadd.f32 %v797_v53, %v719_v43  ;;  %v2430_v52 = vld [vmem:[#allocation62_spill] sm:$0xff] }
  0xc7   :  { %v1073_v22 = vpop.eup %1072  ;;  %v635_v41 = vmul.f32 0.6931472, %v1071_v34  ;;  %1092 = vlog2.f32 %v1927_v14  ;;  %v722_v45 = vmul.f32 %v631_v42, %v2419_v58  ;;  %v768_v46 = vadd.f32 %v767_v37, %v720_v56  ;;  %v2422_v14 = vld [vmem:[#allocation55_spill] sm:$0xff] }
  0xc8   :  { %v1075_v31 = vpop.eup %1074  ;;  %v637_v5 = vmul.f32 0.6931472, %v1073_v22  ;;  %1094 = vlog2.f32 %v1930_v1  ;;  %v723_v25 = vmul.f32 %v633_v57, %v2420_v9  ;;  %v799_v27 = vadd.f32 %v798_v30, %v721_v50  ;;  %v2423_v1 = vld [vmem:[#allocation56_spill] sm:$0xff] }
  0xc9   :  { %v1077_v49 = vpop.eup %1076  ;;  %v639_v16 = vmul.f32 0.6931472, %v1075_v31  ;;  %1096 = vlog2.f32 %v1933_v8  ;;  %v724_v0 = vmul.f32 %v635_v41, %v2421_v24  ;;  %v769_v51 = vadd.f32 %v768_v46, %v722_v45  ;;  %v2424_v8 = vld [vmem:[#allocation57_spill] sm:$0xff] }
  0xca   :  { %v1079_v62 = vpop.eup %1078  ;;  %v641_v55 = vmul.f32 0.6931472, %v1077_v49  ;;  %1098 = vlog2.f32 %v1937_v12  ;;  %v725_v17 = vmul.f32 %v637_v5, %v2422_v14  ;;  %v800_v7 = vadd.f32 %v799_v27, %v723_v25  ;;  %v2425_v12 = vld [vmem:[#allocation58_spill] sm:$0xff]  ;;  %v2433_v27 = vld [vmem:[#allocation65_spill] sm:$0xff] }
  0xcb   :  { %v1081_v3 = vpop.eup %1080  ;;  %v643_v44 = vmul.f32 0.6931472, %v1079_v62  ;;  %1100 = vlog2.f32 %v1940_v13  ;;  %v726_v36 = vmul.f32 %v639_v16, %v2423_v1  ;;  %v770_v54 = vadd.f32 %v769_v51, %v724_v0  ;;  %v2426_v13 = vld [vmem:[#allocation59_spill] sm:$0xff]  ;;  %v2436_v1 = vld [vmem:[#allocation25_spill] sm:$0xff] }
  0xcc   :  { %v1083_v40 = vpop.eup %1082  ;;  %v645_v61 = vmul.f32 0.6931472, %v1081_v3  ;;  %1102 = vlog2.f32 %v1943_v29  ;;  %v727_v23 = vmul.f32 %v641_v55, %v2424_v8  ;;  %v801_v6 = vadd.f32 %v800_v7, %v725_v17  ;;  %v2427_v29 = vld [vmem:[#allocation60_spill] sm:$0xff] }
  0xcd   :  { %v1085_v39 = vpop.eup %1084  ;;  %v647_v38 = vmul.f32 0.6931472, %v1083_v40  ;;  %1104 = vlog2.f32 %v1947_v48  ;;  %v728_v47 = vmul.f32 %v643_v44, %v2425_v12  ;;  %v771_v19 = vadd.f32 %v770_v54, %v726_v36  ;;  %v2428_v48 = vld [vmem:[#allocation61_spill] sm:$0xff] }
  0xce   :  { %v1087_v10 = vpop.eup %1086  ;;  %v649_v33 = vmul.f32 0.6931472, %v1085_v39  ;;  %1106 = vlog2.f32 %v1950_v21  ;;  %v729_v11 = vmul.f32 %v645_v61, %v2426_v13  ;;  %v802_v63 = vadd.f32 %v801_v6, %v727_v23  ;;  %v2429_v21 = vld [vmem:[#allocation69_spill] sm:$0xff]  ;;  %v2437_v61 = vld [vmem:[#allocation27_spill] sm:$0xff]  ;;  %v2438_v39 = vld [vmem:[#allocation28_spill] sm:$0xff] }
  0xcf   :  { %v1089_v43 = vpop.eup %1088  ;;  %v651_v53 = vmul.f32 0.6931472, %v1087_v10  ;;  %1108 = vlog2.f32 %v1953_v2  ;;  %v730_v18 = vmul.f32 %v647_v38, %v2427_v29  ;;  %v772_v42 = vadd.f32 %v771_v19, %v728_v47  ;;  %v2431_v2 = vld [vmem:[#allocation63_spill] sm:$0xff]  ;;  %v2439_v10 = vld [vmem:[#allocation29_spill] sm:$0xff] }
  0xd0   :  { %v1091_v60 = vpop.eup %1090  ;;  %v653_v20 = vmul.f32 0.6931472, %v1089_v43  ;;  %1110 = vlog2.f32 %v1957_v15  ;;  %v731_v56 = vmul.f32 %v649_v33, %v2428_v48  ;;  %v803_v37 = vadd.f32 %v802_v63, %v729_v11  ;;  %v2432_v15 = vld [vmem:[#allocation64_spill] sm:$0xff]  ;;  %v2440_v43 = vld [vmem:[#allocation30_spill] sm:$0xff] }
  0xd1   :  { %v1093_v34 = vpop.eup %1092  ;;  %v655_v57 = vmul.f32 0.6931472, %v1091_v60  ;;  %1112 = vlog2.f32 %v2429_v21  ;;  %v732_v32 = vmul.f32 %v651_v53, %v2430_v52  ;;  %v773_v50 = vadd.f32 %v772_v42, %v730_v18  ;;  %v2441_v60 = vld [vmem:[#allocation70_spill] sm:$0xff] }
  0xd2   :  { %v1095_v30 = vpop.eup %1094  ;;  %v657_v22 = vmul.f32 0.6931472, %v1093_v34  ;;  %1114 = vlog2.f32 %v1964_v28  ;;  %v733_v41 = vmul.f32 %v653_v20, %v2431_v2  ;;  %v804_v58 = vadd.f32 %v803_v37, %v731_v56  ;;  %v2434_v28 = vld [vmem:[#allocation23_spill] sm:$0xff] }
  0xd3   :  { %v1097_v45 = vpop.eup %1096  ;;  %v659_v46 = vmul.f32 0.6931472, %v1095_v30  ;;  %1116 = vlog2.f32 %v1967_v26  ;;  %v734_v31 = vmul.f32 %v655_v57, %v2432_v15  ;;  %v774_v5 = vadd.f32 %v773_v50, %v732_v32  ;;  %v2435_v26 = vld [vmem:[#allocation24_spill] sm:$0xff]  ;;  %v2442_v34 = vld [vmem:[#allocation71_spill] sm:$0xff] }
  0xd4   :  { %v1099_v9 = vpop.eup %1098  ;;  %v661_v25 = vmul.f32 0.6931472, %v1097_v45  ;;  %1118 = vlog2.f32 %v1971_v4  ;;  %v735_v49 = vmul.f32 %v657_v22, %v2433_v27  ;;  %v805_v16 = vadd.f32 %v804_v58, %v733_v41  ;;  %v2443_v50 = vld [vmem:[#allocation72_spill] sm:$0xff]  ;;  %v2444_v58 = vld [vmem:[#allocation73_spill] sm:$0xff] }
  0xd5   :  { %v1101_v24 = vpop.eup %1100  ;;  %v663_v0 = vmul.f32 0.6931472, %v1099_v9  ;;  %1120 = vlog2.f32 %v1976_v35  ;;  %v736_v51 = vmul.f32 %v659_v46, %v2434_v28  ;;  %v775_v62 = vadd.f32 %v774_v5, %v734_v31  ;;  %v2445_v31 = vld [vmem:[#allocation75_spill] sm:$0xff] }
  0xd6   :  { %v1103_v55 = vpop.eup %1102  ;;  %v665_v14 = vmul.f32 0.6931472, %v1101_v24  ;;  %v737_v17 = vmul.f32 %v661_v25, %v2435_v26  ;;  %v806_v7 = vadd.f32 %v805_v16, %v735_v49  ;;  %v2446_v25 = vld [vmem:[#allocation77_spill] sm:$0xff] }
  0xd7   :  { %v1105_v3 = vpop.eup %1104  ;;  %v667_v44 = vmul.f32 0.6931472, %v1103_v55  ;;  %v738_v36 = vmul.f32 %v663_v0, %v2436_v1  ;;  %v776_v4 = vadd.f32 %v775_v62, %v736_v51 }
  0xd8   :  { %v1107_v54 = vpop.eup %1106  ;;  %v669_v40 = vmul.f32 0.6931472, %v1105_v3  ;;  %v739_v8 = vmul.f32 %v665_v14, %v2437_v61  ;;  %v807_v23 = vadd.f32 %v806_v7, %v737_v17 }
  0xd9   :  { %v1109_v6 = vpop.eup %1108  ;;  %v671_v35 = vmul.f32 0.6931472, %v1107_v54  ;;  %v740_v38 = vmul.f32 %v667_v44, %v2438_v39  ;;  %v777_v12 = vadd.f32 %v776_v4, %v738_v36  ;;  %v833_v44 = vlaneseq }
  0xda   :  { %v1111_v47 = vpop.eup %1110  ;;  %v673_v19 = vmul.f32 0.6931472, %v1109_v6  ;;  %v741_v33 = vmul.f32 %v669_v40, %v2439_v10  ;;  %v808_v13 = vadd.f32 %v807_v23, %v739_v8 }
  0xdb   :  { %v1113_v11 = vpop.eup %1112  ;;  %v675_v63 = vmul.f32 0.6931472, %v1111_v47  ;;  %v742_v53 = vmul.f32 %v671_v35, %v2440_v43  ;;  %v778_v29 = vadd.f32 %v777_v12, %v740_v38  ;;  %v834_v1 = vshrl.u32 %v833_v44, 7 }
  0xdc   :  { %v1115_v18 = vpop.eup %1114  ;;  %v677_v42 = vmul.f32 0.6931472, %v1113_v11  ;;  %v743_v20 = vmul.f32 %v673_v19, %v2441_v60  ;;  %v809_v48 = vadd.f32 %v808_v13, %v741_v33  ;;  %v836_v36 = vand.u32 127, %v833_v44 }
  0xdd   :  { %v1117_v56 = vpop.eup %1116  ;;  %v679_v37 = vmul.f32 0.6931472, %v1115_v18  ;;  %v744_v57 = vmul.f32 %v675_v63, %v2442_v34  ;;  %v779_v21 = vadd.f32 %v778_v29, %v742_v53  ;;  %vm837_vm0 = vcmp.eq.s32.totalorder %v834_v1, 0 }
  0xde   :  { %v1119_v52 = vpop.eup %1118  ;;  %v681_v32 = vmul.f32 0.6931472, %v1117_v56  ;;  %v745_v30 = vmul.f32 %v677_v42, %v2443_v50  ;;  %v810_v22 = vadd.f32 %v809_v48, %v743_v20  ;;  %vm838_vm1 = vcmp.eq.s32.totalorder %v836_v36, 0 }
  0xdf   :  { %v1121_v2 = vpop.eup %1120  ;;  %v683_v41 = vmul.f32 0.6931472, %v1119_v52  ;;  %v746_v45 = vmul.f32 %v679_v37, %v2444_v58  ;;  %v780_v46 = vadd.f32 %v779_v21, %v744_v57  ;;  %vm839_vm2 = vmand %vm837_vm0, %vm838_vm1 }
  0xe0   :  { %v685_v15 = vmul.f32 0.6931472, %v1121_v2  ;;  %v747_v5 = vmul.f32 %v681_v32, %v2445_v31  ;;  %v811_v9 = vadd.f32 %v810_v22, %v745_v30 }
  0xe1   :  { %v748_v27 = vmul.f32 %v683_v41, %v2446_v25  ;;  %v781_v49 = vadd.f32 %v780_v46, %v746_v45 }
  0xe2   :  { %v749_v16 = vmul.f32 %v685_v15, %v2383_v59  ;;  %v812_v24 = vadd.f32 %v811_v9, %v747_v5 }
  0xe3   :  { %v782_v0 = vadd.f32 %v781_v49, %v748_v27 }
  0xe4   :  { %v813_v28 = vadd.f32 %v812_v24, %v749_v16 }
  0xe6   :  { %v823_v51 = vadd.f32 %v813_v28, %v782_v0 }
  0xe8   :  { %824 = vadd.xlane.f32.xlu0 %v823_v51 }
 0x175   :  { %v825_v62 = vpop.xlane.xlu0 %824 }
 0x176   :  { %v826_v55 = vrot.slane %v825_v62, 4 }
 0x178   :  { %v827_v14 = vadd.f32 %v826_v55, %v825_v62 }
 0x17a   :  { %v828_v26 = vrot.slane %v827_v14, 2 }
 0x17c   :  { %v829_v17 = vadd.f32 %v828_v26, %v827_v14 }
 0x17e   :  { %v830_v7 = vrot.slane %v829_v17, 1 }
 0x180   :  { %v831_v3 = vadd.f32 %v830_v7, %v829_v17 }
 0x182   :  { %859 = vpush %v831_v3 }
 0x1b3   :  { %s860_s7 = spop %859 }
 0x1b4   :  { %v840_v59 = vstv %s860_s7 }
 0x1b5   :  { %v841_v4 = vsel %vm839_vm2, %v840_v59, 0.0 }
 0x1b6   :  { %842 = vst [vmem:[#allocation8] sm:$0xff] %v841_v4 }
 0x1b7   :  { %1177 = shalt.err (!%p1174_p6)
}
 0x1b8   :  { %s1178_s11 = scalar_lea.hbm %s2101_s2, 128 }
 0x1b9   :  { %p1179_p7 = scmp.ne.s32.totalorder %s2101_s2, %s1178_s11  ;;  %p1182_p8 = scmp.lt.u32.totalorder %s1178_s11, %s2101_s2 }
 0x1bb   :  { %p1184_p9 = pnand %p1182_p8, %p1179_p7 }
 0x1bd   :  { %1187 = shalt.err (!%p1184_p9)
}
 0x1be   :  { %852 = dma.vmem_to_hbm [thread:$0]  %s850_s6, 128, %s2101_s2, [#allocation5]  }
 0x1bf   :  { %1192 = dma.done.wait [#allocation5], 128  }
 0x1c0   :  { %1193 = vsyncadd [#allocation5], 4294967168 }
 0x1c1   :  { %856 = vsyncpa [#allocation4], 1 }
 0x1c2   :  { %857 = vsyncpa [#allocation7], 1 }
 0x1c3   :  { %858 = vsyncpa [#allocation5], 1 }

</bundles_post_ra>
